<compile_context>
chip_gen: v5e
topology: v5e:2x2
jax: 0.10.0
libtpu: 0.0.40
codegen_flags: <defaults>
</compile_context>

<pallas_src>
import functools
from collections import OrderedDict

import numpy as np
import jax
import jax.numpy as jnp
from jax.experimental import pallas as pl
from jax.experimental.pallas import tpu as pltpu


# ---------------------------------------------------------------------------
# Fused Pallas kernel: conv3x3(pad=1) + bias + ReLU + flatten + linear + bias
# ---------------------------------------------------------------------------
def _fused_cnn_kernel(x_ref, mask_ref, wc_ref, bc_ref, wfc_ref, bfc_ref,
                      o_ref, col_ref, lhs_ref, *, batch, c_in, c_out, h, w):
    """Whole forward in one kernel; all intermediates stay in VMEM/vregs.

    x_ref    : (c_in, batch*h*w)        f32   channel-major input, (n,h,w) on lanes
    mask_ref : (9, batch*h*w)           f32   precomputed {0,1} border masks per tap
    wc_ref   : (c_out, 9*c_in)          bf16  conv taps packed, col = t*c_in + c
    bc_ref   : (c_out, 1)               f32   conv bias
    wfc_ref  : (c_out*h*w, hidden_pad)  bf16  fc weight, rows in NCHW-flatten order
    bfc_ref  : (1, hidden_pad)          f32   fc bias (zero padded past hidden)
    o_ref    : (batch, hidden_pad)      f32
    col_ref  : (9*c_in, batch*h*w)      f32   im2col scratch
    lhs_ref  : (batch, c_out*h*w)       f32   fc lhs scratch (NCHW-flatten layout)
    """
    hw = h * w
    m = batch * hw

    # ---- im2col: 9 static lane-rolls (XLU) * precomputed border masks -------
    # roll wrap-around lanes land only on positions the border mask zeroes
    # (requires h >= 2 and w >= 2, asserted in the wrapper).
    xv = x_ref[...]                                            # (c_in, m) f32
    for ky in range(3):
        for kx in range(3):
            t = ky * 3 + kx
            d = (ky - 1) * w + (kx - 1)                        # static tap offset
            shifted = xv if d == 0 else pltpu.roll(xv, shift=(-d) % m, axis=1)
            col_ref[t * c_in:(t + 1) * c_in, :] = shifted * mask_ref[t:t + 1, :]

    # ---- conv: ONE MXU dot (c_out, 9*c_in) x (9*c_in, m), f32 accumulation --
    acc = jnp.dot(wc_ref[...], col_ref[...].astype(jnp.bfloat16),
                  preferred_element_type=jnp.float32)          # (c_out, m)
    a = jnp.maximum(acc + bc_ref[...], 0.0)                    # bias + ReLU, f32

    # ---- relayout (c_out, batch*hw) -> (batch, c_out*hw): PyTorch NCHW flatten
    # 16 static, lane-aligned slice copies (VALU/vst work, no serialized dots).
    for o in range(c_out):
        for n in range(batch):
            lhs_ref[n:n + 1, o * hw:(o + 1) * hw] = a[o:o + 1, n * hw:(n + 1) * hw]

    # ---- fc: ONE MXU dot with lane-dense rhs/output; bias folded in ---------
    out = jnp.dot(lhs_ref[...].astype(jnp.bfloat16), wfc_ref[...],
                  preferred_element_type=jnp.float32) + bfc_ref[...]
    o_ref[...] = out.astype(o_ref.dtype)


@functools.lru_cache(maxsize=None)
def _border_masks(batch, h, w):
    """(9, batch*h*w) {0,1} f32 masks: valid neighbourhood per tap, per image.

    Fully static given (batch, h, w); computed once and cached (review item:
    drop the per-call iota/compare chain).  These masks also zero cross-image
    bleed at image boundaries of the flattened lane axis.
    """
    m = np.arange(batch * h * w)
    hh = (m // w) % h
    ww = m % w
    rows = []
    for ky in range(3):
        for kx in range(3):
            dy, dx = ky - 1, kx - 1
            valid = ((hh + dy >= 0) & (hh + dy < h) &
                     (ww + dx >= 0) & (ww + dx < w))
            rows.append(valid)
    return jnp.asarray(np.stack(rows).astype(np.float32))


@functools.partial(jax.jit, static_argnames=("hidden",))
def fused_forward(x_nchw, masks, wc2d, bc, wfc2d, bfc, *, hidden):
    n, c_in, h, w = x_nchw.shape
    c_out = bc.shape[0]
    hw = h * w
    m_total = n * hw
    hidden_pad = wfc2d.shape[1]
    assert h >= 2 and w >= 2                      # roll-wrap positions are masked
    assert wfc2d.shape[0] == c_out * hw and hidden <= hidden_pad

    # Only per-call layout glue: channel-major flatten of the 8 KiB input so
    # the (n,h,w) axis sits on lanes.  All weight permutations were done once
    # at init.
    x2d = jnp.transpose(x_nchw, (1, 0, 2, 3)).reshape(c_in, m_total) \
             .astype(jnp.float32)

    kernel = functools.partial(_fused_cnn_kernel, batch=n, c_in=c_in,
                               c_out=c_out, h=h, w=w)

    flops = 2 * (c_out * 9 * c_in * m_total + n * (c_out * hw) * hidden_pad)
    bytes_accessed = (x2d.size * 4 + masks.size * 4 + wc2d.size * 2 +
                      bc.size * 4 + wfc2d.size * 2 + bfc.size * 4 +
                      n * hidden_pad * 4)

    vmem = pl.BlockSpec(memory_space=pltpu.MemorySpace.VMEM)
    out = pl.pallas_call(
        kernel,
        out_shape=jax.ShapeDtypeStruct((n, hidden_pad), jnp.float32),
        in_specs=[vmem] * 6,
        out_specs=vmem,
        scratch_shapes=[
            pltpu.VMEM((9 * c_in, m_total), jnp.float32),   # im2col scratch
            pltpu.VMEM((n, c_out * hw), jnp.float32),       # fc lhs scratch
        ],
        cost_estimate=pl.CostEstimate(flops=int(flops), transcendentals=0,
                                      bytes_accessed=int(bytes_accessed)),
    )(x2d, masks, wc2d, bc, wfc2d, bfc)
    return out[:, :hidden]                         # drop the 96 padded outputs


# ---------------------------------------------------------------------------
# The wrapped module (representative of what DataFlow would wrap)
# ---------------------------------------------------------------------------
class SmallCNN:
    """Conv2d(4,8,3,pad=1) -> ReLU -> flatten -> Linear(8*16*16, 32), NCHW API."""

    HIDDEN_PAD = 128                              # lane-dense fc rhs / output

    def __init__(self, c_in=4, c_out=8, spatial=16, hidden=32):
        self.c_in, self.c_out, self.spatial, self.hidden = c_in, c_out, spatial, hidden
        hw = spatial * spatial
        k0, k1, k2, k3 = jax.random.split(jax.random.PRNGKey(42), 4)
        # PyTorch-layout parameters (deterministic).
        self.conv_w = 0.05 * jax.random.normal(k0, (c_out, c_in, 3, 3), jnp.float32)
        self.conv_b = 0.01 * jax.random.normal(k1, (c_out,), jnp.float32)
        fan_in = c_out * hw
        self.fc_w = 0.02 * jax.random.normal(k2, (hidden, fan_in), jnp.float32)
        self.fc_b = 0.01 * jax.random.normal(k3, (hidden,), jnp.float32)

        # Kernel-layout parameters, computed ONCE here (free at init):
        #  * conv weight packed to (c_out, 9*c_in): column index = (ky*3+kx)*c_in + c,
        #    matching the im2col scratch row order -> single conv dot.
        #  * fc weight (c_out*hw, hidden_pad): row f = o*hw + p is exactly the
        #    PyTorch NCHW flatten index, columns zero-padded 32 -> 128 so the fc
        #    rhs / output are lane-dense (no masked 32-wide stores).
        hp = self.HIDDEN_PAD
        self.wc2d = jnp.transpose(self.conv_w, (0, 2, 3, 1)) \
                       .reshape(c_out, 9 * c_in).astype(jnp.bfloat16)
        self.bc = self.conv_b.reshape(c_out, 1).astype(jnp.float32)
        self.wfc2d = jnp.pad(self.fc_w.T, ((0, 0), (0, hp - hidden))) \
                        .astype(jnp.bfloat16)
        self.bfc = jnp.pad(self.fc_b.reshape(1, hidden),
                           ((0, 0), (0, hp - hidden))).astype(jnp.float32)

    def __call__(self, x):
        n, _, h, w = x.shape
        masks = _border_masks(n, h, w)            # cached, static per shape
        return fused_forward(x, masks, self.wc2d, self.bc, self.wfc2d, self.bfc,
                             hidden=self.hidden)

    def reference(self, x):
        """Pure-JAX f32 reference mirroring the PyTorch module semantics."""
        n, c, h, w = x.shape
        xp = jnp.pad(x, ((0, 0), (0, 0), (1, 1), (1, 1)))
        y = jnp.zeros((n, self.conv_w.shape[0], h, w), jnp.float32)
        for ky in range(3):
            for kx in range(3):
                y = y + jnp.einsum('nchw,oc->nohw',
                                   xp[:, :, ky:ky + h, kx:kx + w],
                                   self.conv_w[:, :, ky, kx])
        y = jnp.maximum(y + self.conv_b[None, :, None, None], 0.0)
        flat = y.reshape(n, -1)                   # PyTorch NCHW flatten order
        return flat @ self.fc_w.T + self.fc_b


# ---------------------------------------------------------------------------
# DataFlow: pass-through wrapper (device placement / AST rewriting is a no-op)
# ---------------------------------------------------------------------------
class DataFlow:
    def __init__(self, module, device_ids=None, output_device=None, dim=0,
                 inference_only=False, clear_cache=True, fine_grained=False,
                 focus_operator=False):
        # TODO(synk): the CUDA device enumeration and AST-based forward
        # rewriting (update_flow / _modify_forward / .cuda(non_blocking=True),
        # torch.cuda.empty_cache) is multi-GPU orchestration glue with no
        # Pallas/TPU equivalent; forward-pass compute is a pure pass-through.
        self.module = module
        self.device_ids = [] if device_ids is None else list(device_ids)
        self.output_device = output_device
        self.dim = dim
        self.layer_gpus = OrderedDict()
        self.operator_gpus = OrderedDict()

    def forward(self, *inputs, **kwargs):
        return self.module(*inputs, **kwargs)

    __call__ = forward


# ---------------------------------------------------------------------------
if __name__ == "__main__":
    key = jax.random.PRNGKey(0)
    x = jax.random.normal(key, (2, 4, 16, 16), dtype=jnp.float32)   # NCHW

    model = DataFlow(SmallCNN(c_in=4, c_out=8, spatial=16, hidden=32))
    out = jax.block_until_ready(model(x))
    assert out.shape == (2, 32), out.shape
    assert bool(jnp.all(jnp.isfinite(out)))

    # Numerical check vs the pure-JAX f32 reference (bf16 operands with f32
    # accumulation -> loose tolerance).
    ref = jax.block_until_ready(model.module.reference(x))
    max_err = float(jnp.max(jnp.abs(out - ref)))
    assert max_err < 5e-2, max_err

    # Explicit cross-image border-bleed test (review correctness concern):
    # images differ strongly at their bottom/top rows; any bleed across the
    # flattened image boundary would show up against the reference.
    xb = x.at[0, :, -1, :].set(3.0).at[1, :, 0, :].set(-3.0)
    outb = jax.block_until_ready(model(xb))
    refb = jax.block_until_ready(model.module.reference(xb))
    max_err_b = float(jnp.max(jnp.abs(outb - refb)))
    assert max_err_b < 5e-2, max_err_b

    print("KERNEL_OK")
</pallas_src>

<mosaic_0001>
module attributes {stable_mosaic.version = 11 : i64} {
  func.func @_fused_cnn_kernel(%arg0: memref<4x512xf32, #tpu.memory_space<vmem>>, %arg1: memref<9x512xf32, #tpu.memory_space<vmem>>, %arg2: memref<8x36xbf16, #tpu.memory_space<vmem>>, %arg3: memref<8x1xf32, #tpu.memory_space<vmem>>, %arg4: memref<2048x128xbf16, #tpu.memory_space<vmem>>, %arg5: memref<1x128xf32, #tpu.memory_space<vmem>>, %arg6: memref<2x128xf32, #tpu.memory_space<vmem>>, %arg7: memref<36x512xf32, #tpu.memory_space<vmem>>, %arg8: memref<2x2048xf32, #tpu.memory_space<vmem>>) attributes {dimension_semantics = [], scalar_prefetch = 0 : i64, scratch_operands = 2 : i64, tpu.core_type = #tpu.core_type<tc>} {
    %c0 = arith.constant 0 : index
    %c0_0 = arith.constant 0 : index
    %0 = vector.load %arg0[%c0, %c0_0] : memref<4x512xf32, #tpu.memory_space<vmem>>, vector<4x512xf32>
    %c17_i32 = arith.constant 17 : i32
    %1 = tpu.dynamic_rotate %0 by %c17_i32 dim 1 : vector<4x512xf32>, i32 -> vector<4x512xf32>
    %c0_1 = arith.constant 0 : index
    %c0_2 = arith.constant 0 : index
    %2 = vector.load %arg1[%c0_1, %c0_2] : memref<9x512xf32, #tpu.memory_space<vmem>>, vector<1x512xf32>
    %3 = vector.broadcast %2 : vector<1x512xf32> to vector<4x512xf32>
    %4 = arith.mulf %1, %3 : vector<4x512xf32>
    %c0_3 = arith.constant 0 : index
    %c0_4 = arith.constant 0 : index
    %5 = vector.load %arg7[%c0_3, %c0_4] : memref<36x512xf32, #tpu.memory_space<vmem>>, vector<4x512xf32>
    tpu.vector_store %arg7[%c0_3, %c0_4], %4 {strides = array<i32>} : memref<36x512xf32, #tpu.memory_space<vmem>>, vector<4x512xf32>,
    %c16_i32 = arith.constant 16 : i32
    %6 = tpu.dynamic_rotate %0 by %c16_i32 dim 1 : vector<4x512xf32>, i32 -> vector<4x512xf32>
    %c1 = arith.constant 1 : index
    %c0_5 = arith.constant 0 : index
    %7 = vector.load %arg1[%c1, %c0_5] : memref<9x512xf32, #tpu.memory_space<vmem>>, vector<1x512xf32>
    %8 = vector.broadcast %7 : vector<1x512xf32> to vector<4x512xf32>
    %9 = arith.mulf %6, %8 : vector<4x512xf32>
    %c4 = arith.constant 4 : index
    %c0_6 = arith.constant 0 : index
    %10 = vector.load %arg7[%c4, %c0_6] : memref<36x512xf32, #tpu.memory_space<vmem>>, vector<4x512xf32>
    tpu.vector_store %arg7[%c4, %c0_6], %9 {strides = array<i32>} : memref<36x512xf32, #tpu.memory_space<vmem>>, vector<4x512xf32>,
    %c15_i32 = arith.constant 15 : i32
    %11 = tpu.dynamic_rotate %0 by %c15_i32 dim 1 : vector<4x512xf32>, i32 -> vector<4x512xf32>
    %c2 = arith.constant 2 : index
    %c0_7 = arith.constant 0 : index
    %12 = vector.load %arg1[%c2, %c0_7] : memref<9x512xf32, #tpu.memory_space<vmem>>, vector<1x512xf32>
    %13 = vector.broadcast %12 : vector<1x512xf32> to vector<4x512xf32>
    %14 = arith.mulf %11, %13 : vector<4x512xf32>
    %c8 = arith.constant 8 : index
    %c0_8 = arith.constant 0 : index
    %15 = vector.load %arg7[%c8, %c0_8] : memref<36x512xf32, #tpu.memory_space<vmem>>, vector<4x512xf32>
    tpu.vector_store %arg7[%c8, %c0_8], %14 {strides = array<i32>} : memref<36x512xf32, #tpu.memory_space<vmem>>, vector<4x512xf32>,
    %c1_i32 = arith.constant 1 : i32
    %16 = tpu.dynamic_rotate %0 by %c1_i32 dim 1 : vector<4x512xf32>, i32 -> vector<4x512xf32>
    %c3 = arith.constant 3 : index
    %c0_9 = arith.constant 0 : index
    %17 = vector.load %arg1[%c3, %c0_9] : memref<9x512xf32, #tpu.memory_space<vmem>>, vector<1x512xf32>
    %18 = vector.broadcast %17 : vector<1x512xf32> to vector<4x512xf32>
    %19 = arith.mulf %16, %18 : vector<4x512xf32>
    %c12 = arith.constant 12 : index
    %c0_10 = arith.constant 0 : index
    %20 = vector.load %arg7[%c12, %c0_10] : memref<36x512xf32, #tpu.memory_space<vmem>>, vector<4x512xf32>
    tpu.vector_store %arg7[%c12, %c0_10], %19 {strides = array<i32>} : memref<36x512xf32, #tpu.memory_space<vmem>>, vector<4x512xf32>,
    %c4_11 = arith.constant 4 : index
    %c0_12 = arith.constant 0 : index
    %21 = vector.load %arg1[%c4_11, %c0_12] : memref<9x512xf32, #tpu.memory_space<vmem>>, vector<1x512xf32>
    %22 = vector.broadcast %21 : vector<1x512xf32> to vector<4x512xf32>
    %23 = arith.mulf %0, %22 : vector<4x512xf32>
    %c16 = arith.constant 16 : index
    %c0_13 = arith.constant 0 : index
    %24 = vector.load %arg7[%c16, %c0_13] : memref<36x512xf32, #tpu.memory_space<vmem>>, vector<4x512xf32>
    tpu.vector_store %arg7[%c16, %c0_13], %23 {strides = array<i32>} : memref<36x512xf32, #tpu.memory_space<vmem>>, vector<4x512xf32>,
    %c511_i32 = arith.constant 511 : i32
    %25 = tpu.dynamic_rotate %0 by %c511_i32 dim 1 : vector<4x512xf32>, i32 -> vector<4x512xf32>
    %c5 = arith.constant 5 : index
    %c0_14 = arith.constant 0 : index
    %26 = vector.load %arg1[%c5, %c0_14] : memref<9x512xf32, #tpu.memory_space<vmem>>, vector<1x512xf32>
    %27 = vector.broadcast %26 : vector<1x512xf32> to vector<4x512xf32>
    %28 = arith.mulf %25, %27 : vector<4x512xf32>
    %c20 = arith.constant 20 : index
    %c0_15 = arith.constant 0 : index
    %29 = vector.load %arg7[%c20, %c0_15] : memref<36x512xf32, #tpu.memory_space<vmem>>, vector<4x512xf32>
    tpu.vector_store %arg7[%c20, %c0_15], %28 {strides = array<i32>} : memref<36x512xf32, #tpu.memory_space<vmem>>, vector<4x512xf32>,
    %c497_i32 = arith.constant 497 : i32
    %30 = tpu.dynamic_rotate %0 by %c497_i32 dim 1 : vector<4x512xf32>, i32 -> vector<4x512xf32>
    %c6 = arith.constant 6 : index
    %c0_16 = arith.constant 0 : index
    %31 = vector.load %arg1[%c6, %c0_16] : memref<9x512xf32, #tpu.memory_space<vmem>>, vector<1x512xf32>
    %32 = vector.broadcast %31 : vector<1x512xf32> to vector<4x512xf32>
    %33 = arith.mulf %30, %32 : vector<4x512xf32>
    %c24 = arith.constant 24 : index
    %c0_17 = arith.constant 0 : index
    %34 = vector.load %arg7[%c24, %c0_17] : memref<36x512xf32, #tpu.memory_space<vmem>>, vector<4x512xf32>
    tpu.vector_store %arg7[%c24, %c0_17], %33 {strides = array<i32>} : memref<36x512xf32, #tpu.memory_space<vmem>>, vector<4x512xf32>,
    %c496_i32 = arith.constant 496 : i32
    %35 = tpu.dynamic_rotate %0 by %c496_i32 dim 1 : vector<4x512xf32>, i32 -> vector<4x512xf32>
    %c7 = arith.constant 7 : index
    %c0_18 = arith.constant 0 : index
    %36 = vector.load %arg1[%c7, %c0_18] : memref<9x512xf32, #tpu.memory_space<vmem>>, vector<1x512xf32>
    %37 = vector.broadcast %36 : vector<1x512xf32> to vector<4x512xf32>
    %38 = arith.mulf %35, %37 : vector<4x512xf32>
    %c28 = arith.constant 28 : index
    %c0_19 = arith.constant 0 : index
    %39 = vector.load %arg7[%c28, %c0_19] : memref<36x512xf32, #tpu.memory_space<vmem>>, vector<4x512xf32>
    tpu.vector_store %arg7[%c28, %c0_19], %38 {strides = array<i32>} : memref<36x512xf32, #tpu.memory_space<vmem>>, vector<4x512xf32>,
    %c495_i32 = arith.constant 495 : i32
    %40 = tpu.dynamic_rotate %0 by %c495_i32 dim 1 : vector<4x512xf32>, i32 -> vector<4x512xf32>
    %c8_20 = arith.constant 8 : index
    %c0_21 = arith.constant 0 : index
    %41 = vector.load %arg1[%c8_20, %c0_21] : memref<9x512xf32, #tpu.memory_space<vmem>>, vector<1x512xf32>
    %42 = vector.broadcast %41 : vector<1x512xf32> to vector<4x512xf32>
    %43 = arith.mulf %40, %42 : vector<4x512xf32>
    %c32 = arith.constant 32 : index
    %c0_22 = arith.constant 0 : index
    %44 = vector.load %arg7[%c32, %c0_22] : memref<36x512xf32, #tpu.memory_space<vmem>>, vector<4x512xf32>
    tpu.vector_store %arg7[%c32, %c0_22], %43 {strides = array<i32>} : memref<36x512xf32, #tpu.memory_space<vmem>>, vector<4x512xf32>,
    %c0_23 = arith.constant 0 : index
    %c0_24 = arith.constant 0 : index
    %45 = vector.load %arg2[%c0_23, %c0_24] : memref<8x36xbf16, #tpu.memory_space<vmem>>, vector<8x36xbf16>
    %c0_25 = arith.constant 0 : index
    %c0_26 = arith.constant 0 : index
    %46 = vector.load %arg7[%c0_25, %c0_26] : memref<36x512xf32, #tpu.memory_space<vmem>>, vector<36x512xf32>
    %47 = arith.truncf %46 : vector<36x512xf32> to vector<36x512xbf16>
    %cst = arith.constant dense<0.000000e+00> : vector<8x512xf32>
    %48 = tpu.matmul %45, %47, %cst {dimension_numbers = #tpu.dot_dimension_numbers<[1], [0], [0], [1], [0, 0, 1, 1], [], []>} : vector<8x36xbf16>, vector<36x512xbf16>, vector<8x512xf32> -> vector<8x512xf32>
    %c0_27 = arith.constant 0 : index
    %c0_28 = arith.constant 0 : index
    %49 = vector.load %arg3[%c0_27, %c0_28] : memref<8x1xf32, #tpu.memory_space<vmem>>, vector<8x1xf32>
    %50 = vector.broadcast %49 : vector<8x1xf32> to vector<8x512xf32>
    %51 = arith.addf %48, %50 : vector<8x512xf32>
    %cst_29 = arith.constant 0.000000e+00 : f32
    %52 = vector.broadcast %cst_29 : f32 to vector<8x512xf32>
    %53 = arith.maximumf %51, %52 : vector<8x512xf32>
    %54 = vector.extract_strided_slice %53 {offsets = [0, 0], sizes = [1, 256], strides = [1, 1]} : vector<8x512xf32> to vector<1x256xf32>
    %c0_30 = arith.constant 0 : index
    %c0_31 = arith.constant 0 : index
    %55 = vector.load %arg8[%c0_30, %c0_31] : memref<2x2048xf32, #tpu.memory_space<vmem>>, vector<1x256xf32>
    tpu.vector_store %arg8[%c0_30, %c0_31], %54 {strides = array<i32>} : memref<2x2048xf32, #tpu.memory_space<vmem>>, vector<1x256xf32>,
    %56 = vector.extract_strided_slice %53 {offsets = [0, 256], sizes = [1, 256], strides = [1, 1]} : vector<8x512xf32> to vector<1x256xf32>
    %c1_32 = arith.constant 1 : index
    %c0_33 = arith.constant 0 : index
    %57 = vector.load %arg8[%c1_32, %c0_33] : memref<2x2048xf32, #tpu.memory_space<vmem>>, vector<1x256xf32>
    tpu.vector_store %arg8[%c1_32, %c0_33], %56 {strides = array<i32>} : memref<2x2048xf32, #tpu.memory_space<vmem>>, vector<1x256xf32>,
    %58 = vector.extract_strided_slice %53 {offsets = [1, 0], sizes = [1, 256], strides = [1, 1]} : vector<8x512xf32> to vector<1x256xf32>
    %c0_34 = arith.constant 0 : index
    %c256 = arith.constant 256 : index
    %59 = vector.load %arg8[%c0_34, %c256] : memref<2x2048xf32, #tpu.memory_space<vmem>>, vector<1x256xf32>
    tpu.vector_store %arg8[%c0_34, %c256], %58 {strides = array<i32>} : memref<2x2048xf32, #tpu.memory_space<vmem>>, vector<1x256xf32>,
    %60 = vector.extract_strided_slice %53 {offsets = [1, 256], sizes = [1, 256], strides = [1, 1]} : vector<8x512xf32> to vector<1x256xf32>
    %c1_35 = arith.constant 1 : index
    %c256_36 = arith.constant 256 : index
    %61 = vector.load %arg8[%c1_35, %c256_36] : memref<2x2048xf32, #tpu.memory_space<vmem>>, vector<1x256xf32>
    tpu.vector_store %arg8[%c1_35, %c256_36], %60 {strides = array<i32>} : memref<2x2048xf32, #tpu.memory_space<vmem>>, vector<1x256xf32>,
    %62 = vector.extract_strided_slice %53 {offsets = [2, 0], sizes = [1, 256], strides = [1, 1]} : vector<8x512xf32> to vector<1x256xf32>
    %c0_37 = arith.constant 0 : index
    %c512 = arith.constant 512 : index
    %63 = vector.load %arg8[%c0_37, %c512] : memref<2x2048xf32, #tpu.memory_space<vmem>>, vector<1x256xf32>
    tpu.vector_store %arg8[%c0_37, %c512], %62 {strides = array<i32>} : memref<2x2048xf32, #tpu.memory_space<vmem>>, vector<1x256xf32>,
    %64 = vector.extract_strided_slice %53 {offsets = [2, 256], sizes = [1, 256], strides = [1, 1]} : vector<8x512xf32> to vector<1x256xf32>
    %c1_38 = arith.constant 1 : index
    %c512_39 = arith.constant 512 : index
    %65 = vector.load %arg8[%c1_38, %c512_39] : memref<2x2048xf32, #tpu.memory_space<vmem>>, vector<1x256xf32>
    tpu.vector_store %arg8[%c1_38, %c512_39], %64 {strides = array<i32>} : memref<2x2048xf32, #tpu.memory_space<vmem>>, vector<1x256xf32>,
    %66 = vector.extract_strided_slice %53 {offsets = [3, 0], sizes = [1, 256], strides = [1, 1]} : vector<8x512xf32> to vector<1x256xf32>
    %c0_40 = arith.constant 0 : index
    %c768 = arith.constant 768 : index
    %67 = vector.load %arg8[%c0_40, %c768] : memref<2x2048xf32, #tpu.memory_space<vmem>>, vector<1x256xf32>
    tpu.vector_store %arg8[%c0_40, %c768], %66 {strides = array<i32>} : memref<2x2048xf32, #tpu.memory_space<vmem>>, vector<1x256xf32>,
    %68 = vector.extract_strided_slice %53 {offsets = [3, 256], sizes = [1, 256], strides = [1, 1]} : vector<8x512xf32> to vector<1x256xf32>
    %c1_41 = arith.constant 1 : index
    %c768_42 = arith.constant 768 : index
    %69 = vector.load %arg8[%c1_41, %c768_42] : memref<2x2048xf32, #tpu.memory_space<vmem>>, vector<1x256xf32>
    tpu.vector_store %arg8[%c1_41, %c768_42], %68 {strides = array<i32>} : memref<2x2048xf32, #tpu.memory_space<vmem>>, vector<1x256xf32>,
    %70 = vector.extract_strided_slice %53 {offsets = [4, 0], sizes = [1, 256], strides = [1, 1]} : vector<8x512xf32> to vector<1x256xf32>
    %c0_43 = arith.constant 0 : index
    %c1024 = arith.constant 1024 : index
    %71 = vector.load %arg8[%c0_43, %c1024] : memref<2x2048xf32, #tpu.memory_space<vmem>>, vector<1x256xf32>
    tpu.vector_store %arg8[%c0_43, %c1024], %70 {strides = array<i32>} : memref<2x2048xf32, #tpu.memory_space<vmem>>, vector<1x256xf32>,
    %72 = vector.extract_strided_slice %53 {offsets = [4, 256], sizes = [1, 256], strides = [1, 1]} : vector<8x512xf32> to vector<1x256xf32>
    %c1_44 = arith.constant 1 : index
    %c1024_45 = arith.constant 1024 : index
    %73 = vector.load %arg8[%c1_44, %c1024_45] : memref<2x2048xf32, #tpu.memory_space<vmem>>, vector<1x256xf32>
    tpu.vector_store %arg8[%c1_44, %c1024_45], %72 {strides = array<i32>} : memref<2x2048xf32, #tpu.memory_space<vmem>>, vector<1x256xf32>,
    %74 = vector.extract_strided_slice %53 {offsets = [5, 0], sizes = [1, 256], strides = [1, 1]} : vector<8x512xf32> to vector<1x256xf32>
    %c0_46 = arith.constant 0 : index
    %c1280 = arith.constant 1280 : index
    %75 = vector.load %arg8[%c0_46, %c1280] : memref<2x2048xf32, #tpu.memory_space<vmem>>, vector<1x256xf32>
    tpu.vector_store %arg8[%c0_46, %c1280], %74 {strides = array<i32>} : memref<2x2048xf32, #tpu.memory_space<vmem>>, vector<1x256xf32>,
    %76 = vector.extract_strided_slice %53 {offsets = [5, 256], sizes = [1, 256], strides = [1, 1]} : vector<8x512xf32> to vector<1x256xf32>
    %c1_47 = arith.constant 1 : index
    %c1280_48 = arith.constant 1280 : index
    %77 = vector.load %arg8[%c1_47, %c1280_48] : memref<2x2048xf32, #tpu.memory_space<vmem>>, vector<1x256xf32>
    tpu.vector_store %arg8[%c1_47, %c1280_48], %76 {strides = array<i32>} : memref<2x2048xf32, #tpu.memory_space<vmem>>, vector<1x256xf32>,
    %78 = vector.extract_strided_slice %53 {offsets = [6, 0], sizes = [1, 256], strides = [1, 1]} : vector<8x512xf32> to vector<1x256xf32>
    %c0_49 = arith.constant 0 : index
    %c1536 = arith.constant 1536 : index
    %79 = vector.load %arg8[%c0_49, %c1536] : memref<2x2048xf32, #tpu.memory_space<vmem>>, vector<1x256xf32>
    tpu.vector_store %arg8[%c0_49, %c1536], %78 {strides = array<i32>} : memref<2x2048xf32, #tpu.memory_space<vmem>>, vector<1x256xf32>,
    %80 = vector.extract_strided_slice %53 {offsets = [6, 256], sizes = [1, 256], strides = [1, 1]} : vector<8x512xf32> to vector<1x256xf32>
    %c1_50 = arith.constant 1 : index
    %c1536_51 = arith.constant 1536 : index
    %81 = vector.load %arg8[%c1_50, %c1536_51] : memref<2x2048xf32, #tpu.memory_space<vmem>>, vector<1x256xf32>
    tpu.vector_store %arg8[%c1_50, %c1536_51], %80 {strides = array<i32>} : memref<2x2048xf32, #tpu.memory_space<vmem>>, vector<1x256xf32>,
    %82 = vector.extract_strided_slice %53 {offsets = [7, 0], sizes = [1, 256], strides = [1, 1]} : vector<8x512xf32> to vector<1x256xf32>
    %c0_52 = arith.constant 0 : index
    %c1792 = arith.constant 1792 : index
    %83 = vector.load %arg8[%c0_52, %c1792] : memref<2x2048xf32, #tpu.memory_space<vmem>>, vector<1x256xf32>
    tpu.vector_store %arg8[%c0_52, %c1792], %82 {strides = array<i32>} : memref<2x2048xf32, #tpu.memory_space<vmem>>, vector<1x256xf32>,
    %84 = vector.extract_strided_slice %53 {offsets = [7, 256], sizes = [1, 256], strides = [1, 1]} : vector<8x512xf32> to vector<1x256xf32>
    %c1_53 = arith.constant 1 : index
    %c1792_54 = arith.constant 1792 : index
    %85 = vector.load %arg8[%c1_53, %c1792_54] : memref<2x2048xf32, #tpu.memory_space<vmem>>, vector<1x256xf32>
    tpu.vector_store %arg8[%c1_53, %c1792_54], %84 {strides = array<i32>} : memref<2x2048xf32, #tpu.memory_space<vmem>>, vector<1x256xf32>,
    %c0_55 = arith.constant 0 : index
    %c0_56 = arith.constant 0 : index
    %86 = vector.load %arg8[%c0_55, %c0_56] : memref<2x2048xf32, #tpu.memory_space<vmem>>, vector<2x2048xf32>
    %87 = arith.truncf %86 : vector<2x2048xf32> to vector<2x2048xbf16>
    %c0_57 = arith.constant 0 : index
    %c0_58 = arith.constant 0 : index
    %88 = vector.load %arg4[%c0_57, %c0_58] : memref<2048x128xbf16, #tpu.memory_space<vmem>>, vector<2048x128xbf16>
    %cst_59 = arith.constant dense<0.000000e+00> : vector<2x128xf32>
    %89 = tpu.matmul %87, %88, %cst_59 {dimension_numbers = #tpu.dot_dimension_numbers<[1], [0], [0], [1], [0, 0, 1, 1], [], []>} : vector<2x2048xbf16>, vector<2048x128xbf16>, vector<2x128xf32> -> vector<2x128xf32>
    %c0_60 = arith.constant 0 : index
    %c0_61 = arith.constant 0 : index
    %90 = vector.load %arg5[%c0_60, %c0_61] : memref<1x128xf32, #tpu.memory_space<vmem>>, vector<1x128xf32>
    %91 = vector.broadcast %90 : vector<1x128xf32> to vector<2x128xf32>
    %92 = arith.addf %89, %91 : vector<2x128xf32>
    %c0_62 = arith.constant 0 : index
    %c0_63 = arith.constant 0 : index
    %93 = vector.load %arg6[%c0_62, %c0_63] : memref<2x128xf32, #tpu.memory_space<vmem>>, vector<2x128xf32>
    tpu.vector_store %arg6[%c0_62, %c0_63], %92 {strides = array<i32>} : memref<2x128xf32, #tpu.memory_space<vmem>>, vector<2x128xf32>,
    return
  }
}

</mosaic_0001>

<bundles_post_ra>
// kernel: fused_forward.1
= control target key start
LH: loop header
LB: loop body
LE: loop exit
PB: predicated region body
PF: predicated region fallthrough
CT: control target
= control target key end

     0   :  { %11 = vsyncpa [#allocation5], 0  ;;  %s3066_s0 = inlined_call_operand.vmem [shape: f32[4,512], index: 0, kind: input, shape index: {}]   ;;  %s3067_s1 = inlined_call_operand.vmem [shape: f32[9,512], index: 1, kind: input, shape index: {}]   ;;  %s3068_s2 = inlined_call_operand.vmem [shape: bf16[8,36], index: 2, kind: input, shape index: {}]   ;;  %s3069_s3 = inlined_call_operand.vmem [shape: f32[8,1], index: 3, kind: input, shape index: {}]   ;;  %s3070_s4 = inlined_call_operand.hbm [shape: bf16[2048,128], index: 4, kind: input, shape index: {}]   ;;  %s3071_s5 = inlined_call_operand.vmem [shape: f32[1,128], index: 5, kind: input, shape index: {}]   ;;  %s3072_s6 = inlined_call_operand.hbm [shape: f32[2,128], index: 6, kind: output, shape index: {}]  }
   0x1   :  { %12 = vsyncpa [#allocation6], 0  ;;  %s25_s23 = sshll.u32 %s3070_s4, 4  ;;  %s2734_s24 = smov [#allocation4]   ;;  %s26_s23 = int_to_ptr.hbm [resolvable:$true] %s25_s23 }
   0x2   :  { %s27_s25 = sshll.u32 %s2734_s24, 4  ;;  %s2735_s26 = smov 64   ;;  %s28_s25 = int_to_ptr.vmem [resolvable:$true] %s27_s25 }
   0x3   :  { %s2736_s27 = smov 4  }
   0x4   :  { %33 = dma.hbm_to_vmem [thread:$0]  %s26_s23, 16384, %s28_s25, [#allocation5], %s2735_s26, %s2735_s26, %s2736_s27  }
   0x5   :  { %2730 = dma.done.wait [#allocation5], 16384  }
   0x6   :  { %2731 = vsyncadd [#allocation5], 4294950912  ;;  %v2788_v0 = vld [vmem:[%s3066_s0 + $0x8] sm:$0xff]  ;;  %v2793_v1 = vld [vmem:[%s3066_s0] sm:$0xff]  ;;  %s2737_s4 = smov 17   ;;  %s2738_s9 = smov 16   ;;  %v64_v51 = vlaneseq }
   0x7   :  { %47 = vst [vmem:[#allocation1 + $0x10] ss:$2 sm:$0xff] %v2788_v0  ;;  %v2017_v6 = vld [vmem:[%s3067_s1 + $0x4] ss:$8 sm:$0xf]  ;;  %vm251_vm0 = vcmask 1043456  }
   0x8   :  { %45 = vst [vmem:[#allocation1] ss:$2 sm:$0xff] %v2793_v1  ;;  %v248_v9 = vperm.slane %v2017_v6, 3  ;;  %v246_v12 = vperm.slane %v2017_v6, 1  ;;  %v247_v13 = vperm.slane %v2017_v6, 2  ;;  %v245_v15 = vperm.slane %v2017_v6, 0 }
   0x9   :  { %s2739_s10 = smov 15   ;;  %s2740_s11 = smov 1   ;;  %v2845_v52 = vld [vmem:[%s3067_s1] ss:$8 sm:$0xf]  ;;  %v2848_v53 = vand.u32 127, %v64_v51 }
   0xa   :  { %v250_v14 = vrot.slane %v248_v9, 4  ;;  %v249_v16 = vrot.slane %v246_v12, 4  ;;  %s2741_s12 = smov 127   ;;  %s2742_s13 = smov 113   ;;  %v73_v54 = vperm.slane %v2845_v52, 0  ;;  %v74_v55 = vperm.slane %v2845_v52, 1 }
   0xb   :  { %s2743_s14 = smov 112   ;;  %s2744_s15 = smov 111   ;;  %vm66_vm1 = vcmp.lt.s32.totalorder %v2848_v53, 17  ;;  %v2014_v63 = vld [vmem:[%s3067_s1 + $0x1] ss:$8 sm:$0xf] }
   0xc   :  { %v253_v19 = vsel %vm251_vm0, %v247_v13, %v250_v14  ;;  %v252_v22 = vsel %vm251_vm0, %v245_v15, %v249_v16  ;;  %vm108_vm2 = vcmp.lt.s32.totalorder %v2848_v53, 16  ;;  %v119_v12 = vperm.slane %v2014_v63, 3 }
   0xd   :  { %v257_v23 = vmul.f32 %v253_v19, %v2788_v0  ;;  %v256_v24 = vmul.f32 %v252_v22, %v2793_v1  ;;  %v2880_v19 = vld [vmem:[%s3067_s1 + $0x3] ss:$8 sm:$0xf]  ;;  %vm206_vm3 = vcmp.lt.s32.totalorder %v2848_v53, 1  ;;  %vm294_vm4 = vcmp.lt.s32.totalorder %v2848_v53, 127 }
   0xe   :  { %v51_v2 = vld.sshfl [vmem:[#allocation1 + $0x18] sm:$0xff pattern:$0x75316420]  ;;  %v2797_v3 = vld.sshfl [vmem:[#allocation1 + $0x10] sm:$0xff pattern:$0x75316420] }
   0xf   :  { %62 = vrot.lane.b32.xlu0 %v51_v2, %s2737_s4  ;;  %91 = vst [vmem:[#allocation1 + $0x10] ss:$2 sm:$0xff] %v2788_v0  ;;  %v48_v4 = vld.sshfl [vmem:[#allocation1] sm:$0xff pattern:$0x75316420]  ;;  %v214_v22 = vperm.slane %v2880_v19, 0 }
  0x10   :  { %v49_v5 = vld.sshfl [vmem:[#allocation1 + $0x8] sm:$0xff pattern:$0x75316420]  ;;  %56 = vrot.lane.b32.xlu1 %v48_v4, %s2737_s4  ;;  %vm349_vm5 = vcmp.lt.s32.totalorder %v2848_v53, 113  ;;  %vm392_vm6 = vcmp.lt.s32.totalorder %v2848_v53, 112  ;;  %vm447_vm7 = vcmp.lt.s32.totalorder %v2848_v53, 111 }
  0x11   :  { %89 = vst [vmem:[#allocation1] ss:$2 sm:$0xff] %v2793_v1  ;;  %58 = vrot.lane.b32.xlu2 %v49_v5, %s2737_s4  ;;  %vm163_vm8 = vcmp.lt.s32.totalorder %v2848_v53, 15  ;;  %vm514_vm9 = vcmask 1041408   ;;  %vm510_vm10 = vcmask 293888   ;;  %vm586_vm11 = vcmask 1040384  }
  0x12   :  { %vm2987_vm12 = vcmp.lt.s32.totalorder %v64_v51, 256 }
  0x16   :  { %v94_v7 = vld.sshfl [vmem:[#allocation1 + $0x10] sm:$0xff pattern:$0x75316420]  ;;  %v95_v8 = vld.sshfl [vmem:[#allocation1 + $0x18] sm:$0xff pattern:$0x75316420] }
  0x17   :  { %146 = vst [vmem:[#allocation1 + $0x10] ss:$2 sm:$0xff] %v2788_v0 }
  0x18   :  { %v93_v10 = vld.sshfl [vmem:[#allocation1 + $0x8] sm:$0xff pattern:$0x75316420]  ;;  %v92_v11 = vld.sshfl [vmem:[#allocation1] sm:$0xff pattern:$0x75316420] }
  0x19   :  { %102 = vrot.lane.b32.xlu1 %v93_v10, %s2738_s9  ;;  %100 = vrot.lane.b32.xlu0 %v92_v11, %s2738_s9  ;;  %144 = vst [vmem:[#allocation1] ss:$2 sm:$0xff] %v2793_v1  ;;  %v118_v11 = vperm.slane %v2014_v63, 2 }
  0x1a   :  { %106 = vrot.lane.b32.xlu2 %v95_v8, %s2738_s9 }
  0x1e   :  { %v2809_v17 = vld.sshfl [vmem:[#allocation1 + $0x10] sm:$0xff pattern:$0x75316420]  ;;  %v2811_v18 = vld.sshfl [vmem:[#allocation1 + $0x18] sm:$0xff pattern:$0x75316420] }
  0x1f   :  { %189 = vst [vmem:[#allocation1 + $0x10] ss:$2 sm:$0xff] %v2788_v0 }
  0x20   :  { %v2814_v20 = vld.sshfl [vmem:[#allocation1 + $0x8] sm:$0xff pattern:$0x75316420]  ;;  %v147_v21 = vld.sshfl [vmem:[#allocation1] sm:$0xff pattern:$0x75316420] }
  0x21   :  { %104 = vrot.lane.b32.xlu1 %v94_v7, %s2738_s9  ;;  %187 = vst [vmem:[#allocation1] ss:$2 sm:$0xff] %v2793_v1 }
  0x22   :  { %155 = vrot.lane.b32.xlu2 %v147_v21, %s2739_s10 }
  0x26   :  { %v192_v25 = vld.sshfl [vmem:[#allocation1 + $0x10] sm:$0xff pattern:$0x75316420]  ;;  %v193_v26 = vld.sshfl [vmem:[#allocation1 + $0x18] sm:$0xff pattern:$0x75316420] }
  0x27   :  { %262 = vst [vmem:[#allocation1 + $0x10] ss:$2 sm:$0xff] %v257_v23  ;;  %v215_v23 = vperm.slane %v2880_v19, 1 }
  0x28   :  { %v191_v27 = vld.sshfl [vmem:[#allocation1 + $0x8] sm:$0xff pattern:$0x75316420]  ;;  %v190_v28 = vld.sshfl [vmem:[#allocation1] sm:$0xff pattern:$0x75316420] }
  0x29   :  { %200 = vrot.lane.b32.xlu1 %v191_v27, %s2740_s11  ;;  %198 = vrot.lane.b32.xlu0 %v190_v28, %s2740_s11  ;;  %260 = vst [vmem:[#allocation1] ss:$2 sm:$0xff] %v256_v24  ;;  %v2018_v24 = vld [vmem:[%s3067_s1 + $0x5] ss:$8 sm:$0xf] }
  0x2a   :  { %204 = vrot.lane.b32.xlu2 %v193_v26, %s2740_s11  ;;  %v302_v27 = vperm.slane %v2018_v24, 0 }
  0x2e   :  { %v265_v29 = vld.sshfl [vmem:[#allocation1 + $0x10] sm:$0xff pattern:$0x75316420]  ;;  %v266_v30 = vld.sshfl [vmem:[#allocation1 + $0x18] sm:$0xff pattern:$0x75316420] }
  0x2f   :  { %273 = vst [vmem:[#allocation2 + $0x28] sm:$0xf] %v265_v29 }
  0x30   :  { %274 = vst [vmem:[#allocation2 + $0x40] sm:$0xf] %v266_v30  ;;  %v263_v31 = vld.sshfl [vmem:[#allocation1] sm:$0xff pattern:$0x75316420] }
  0x31   :  { %277 = vst [vmem:[#allocation1 + $0x10] ss:$2 sm:$0xff] %v2788_v0  ;;  %v264_v32 = vld.sshfl [vmem:[#allocation1 + $0x8] sm:$0xff pattern:$0x75316420] }
  0x32   :  { %271 = vst [vmem:[#allocation2 + $0x8] sm:$0xf] %v263_v31 }
  0x33   :  { %272 = vst [vmem:[#allocation2 + $0x88] sm:$0xf] %v264_v32 }
  0x34   :  { %275 = vst [vmem:[#allocation1] ss:$2 sm:$0xff] %v2793_v1 }
  0x38   :  { %v280_v33 = vld.sshfl [vmem:[#allocation1 + $0x10] sm:$0xff pattern:$0x75316420]  ;;  %v281_v34 = vld.sshfl [vmem:[#allocation1 + $0x18] sm:$0xff pattern:$0x75316420] }
  0x39   :  { %332 = vst [vmem:[#allocation1 + $0x10] ss:$2 sm:$0xff] %v2788_v0  ;;  %292 = vrot.lane.b32.xlu1 %v281_v34, %s2741_s12  ;;  %290 = vrot.lane.b32.xlu0 %v280_v33, %s2741_s12 }
  0x3b   :  { %v278_v35 = vld.sshfl [vmem:[#allocation1] sm:$0xff pattern:$0x75316420]  ;;  %v279_v36 = vld.sshfl [vmem:[#allocation1 + $0x8] sm:$0xff pattern:$0x75316420] }
  0x3c   :  { %286 = vrot.lane.b32.xlu2 %v278_v35, %s2741_s12  ;;  %330 = vst [vmem:[#allocation1] ss:$2 sm:$0xff] %v2793_v1 }
  0x40   :  { %v335_v37 = vld.sshfl [vmem:[#allocation1 + $0x10] sm:$0xff pattern:$0x75316420]  ;;  %v336_v38 = vld.sshfl [vmem:[#allocation1 + $0x18] sm:$0xff pattern:$0x75316420] }
  0x41   :  { %345 = vrot.lane.b32.xlu1 %v335_v37, %s2742_s13  ;;  %375 = vst [vmem:[#allocation1 + $0x10] ss:$2 sm:$0xff] %v2788_v0 }
  0x43   :  { %v334_v39 = vld.sshfl [vmem:[#allocation1 + $0x8] sm:$0xff pattern:$0x75316420]  ;;  %v333_v40 = vld.sshfl [vmem:[#allocation1] sm:$0xff pattern:$0x75316420] }
  0x44   :  { %288 = vrot.lane.b32.xlu2 %v279_v36, %s2741_s12  ;;  %343 = vrot.lane.b32.xlu0 %v334_v39, %s2742_s13  ;;  %373 = vst [vmem:[#allocation1] ss:$2 sm:$0xff] %v2793_v1  ;;  %v305_v39 = vperm.slane %v2018_v24, 3  ;;  %s2004_s12 = sshll.u32 %s3072_s6, 4  ;;  %s2005_s12 = int_to_ptr.hbm [resolvable:$true] %s2004_s12 }
  0x48   :  { %v379_v41 = vld.sshfl [vmem:[#allocation1 + $0x18] sm:$0xff pattern:$0x75316420]  ;;  %v378_v42 = vld.sshfl [vmem:[#allocation1 + $0x10] sm:$0xff pattern:$0x75316420] }
  0x49   :  { %430 = vst [vmem:[#allocation1 + $0x10] ss:$2 sm:$0xff] %v2788_v0  ;;  %v116_v0 = vperm.slane %v2014_v63, 0 }
  0x4b   :  { %v376_v43 = vld.sshfl [vmem:[#allocation1] sm:$0xff pattern:$0x75316420]  ;;  %v377_v44 = vld.sshfl [vmem:[#allocation1 + $0x8] sm:$0xff pattern:$0x75316420] }
  0x4c   :  { %347 = vrot.lane.b32.xlu0 %v336_v38, %s2742_s13  ;;  %341 = vrot.lane.b32.xlu2 %v333_v40, %s2742_s13  ;;  %428 = vst [vmem:[#allocation1] ss:$2 sm:$0xff] %v2793_v1  ;;  %v117_v1 = vperm.slane %v2014_v63, 1  ;;  %v303_v40 = vperm.slane %v2018_v24, 1 }
  0x4d   :  { %384 = vrot.lane.b32.xlu1 %v376_v43, %s2743_s14 }
  0x50   :  { %v433_v45 = vld.sshfl [vmem:[#allocation1 + $0x10] sm:$0xff pattern:$0x75316420]  ;;  %v434_v47 = vld.sshfl [vmem:[#allocation1 + $0x18] sm:$0xff pattern:$0x75316420] }
  0x53   :  { %v431_v46 = vld.sshfl [vmem:[#allocation1] sm:$0xff pattern:$0x75316420]  ;;  %v432_v48 = vld.sshfl [vmem:[#allocation1 + $0x8] sm:$0xff pattern:$0x75316420] }
  0x54   :  { %388 = vrot.lane.b32.xlu0 %v378_v42, %s2743_s14  ;;  %386 = vrot.lane.b32.xlu2 %v377_v44, %s2743_s14 }
  0x55   :  { %443 = vrot.lane.b32.xlu1 %v433_v45, %s2744_s15 }
  0x5c   :  { %390 = vrot.lane.b32.xlu2 %v379_v41, %s2743_s14  ;;  %439 = vrot.lane.b32.xlu0 %v431_v46, %s2744_s15  ;;  %v304_v41 = vperm.slane %v2018_v24, 2 }
  0x5d   :  { %445 = vrot.lane.b32.xlu1 %v434_v47, %s2744_s15 }
  0x64   :  { %202 = vrot.lane.b32.xlu2 %v192_v25, %s2740_s11  ;;  %441 = vrot.lane.b32.xlu0 %v432_v48, %s2744_s15 }
  0x65   :  { %161 = vrot.lane.b32.xlu1 %v2811_v18, %s2739_s10 }
  0x6b   :  { %v2838_v49 = vpop.permute.xlu2 %58 }
  0x6c   :  { %157 = vrot.lane.b32.xlu0 %v2814_v20, %s2739_s10 }
  0x6d   :  { %159 = vrot.lane.b32.xlu1 %v2809_v17, %s2739_s10 }
  0x74   :  { %60 = vrot.lane.b32.xlu0 %v2797_v3, %s2737_s4  ;;  %v107_v50 = vpop.permute.xlu2 %106 }
  0x7c   :  { %v2855_v57 = vpop.permute.xlu2 %155 }
  0x81   :  { %v2853_v56 = vpop.permute.xlu0 %62 }
  0x82   :  { %v57_v58 = vpop.permute.xlu1 %56 }
  0x83   :  { %v69_v59 = vsel %vm66_vm1, %v57_v58, %v2838_v49  ;;  %v70_v60 = vsel %vm66_vm1, %v2853_v56, %v57_v58 }
  0x84   :  { %v81_v61 = vmul.f32 %v73_v54, %v70_v60  ;;  %v82_v62 = vmul.f32 %v74_v55, %v69_v59  ;;  %v2867_v4 = vpop.permute.xlu2 %204  ;;  %v2019_v60 = vld [vmem:[%s3067_s1 + $0x6] ss:$8 sm:$0xf] }
  0x85   :  { %v358_v63 = vperm.slane %v2019_v60, 1 }
  0x86   :  { %85 = vst [vmem:[#allocation2] sm:$0xf] %v81_v61 }
  0x87   :  { %86 = vst [vmem:[#allocation2 + $0x38] sm:$0xf] %v82_v62  ;;  %v357_v62 = vperm.slane %v2019_v60, 0 }
  0x8b   :  { %v103_v2 = vpop.permute.xlu1 %102  ;;  %v101_v3 = vpop.permute.xlu0 %100 }
  0x8c   :  { %v111_v5 = vsel %vm108_vm2, %v101_v3, %v103_v2  ;;  %v112_v6 = vsel %vm108_vm2, %v107_v50, %v101_v3 }
  0x8d   :  { %v124_v7 = vmul.f32 %v116_v0, %v112_v6  ;;  %v125_v8 = vmul.f32 %v117_v1, %v111_v5 }
  0x8f   :  { %v132_v9 = vrot.slane %v124_v7, 4  ;;  %v133_v10 = vrot.slane %v125_v8, 4  ;;  %v2020_v7 = vld [vmem:[%s3067_s1 + $0x7] ss:$8 sm:$0xf]  ;;  %v359_v8 = vperm.slane %v2019_v60, 2 }
  0x91   :  { %140 = vst [vmem:[#allocation2] sm:$0xf0] %v132_v9  ;;  %v360_v9 = vperm.slane %v2019_v60, 3 }
  0x92   :  { %141 = vst [vmem:[#allocation2 + $0x38] sm:$0xf0] %v133_v10  ;;  %v216_v10 = vperm.slane %v2880_v19, 2 }
  0x93   :  { %v105_v13 = vpop.permute.xlu1 %104 }
  0x94   :  { %v109_v14 = vsel %vm108_vm2, %v105_v13, %v107_v50  ;;  %v110_v15 = vsel %vm108_vm2, %v103_v2, %v105_v13 }
  0x95   :  { %v126_v16 = vmul.f32 %v118_v11, %v110_v15  ;;  %v127_v17 = vmul.f32 %v119_v12, %v109_v14  ;;  %v217_v11 = vperm.slane %v2880_v19, 3  ;;  %v400_v14 = vperm.slane %v2020_v7, 0 }
  0x96   :  { %v287_v18 = vpop.permute.xlu2 %286  ;;  %v403_v15 = vperm.slane %v2020_v7, 3 }
  0x97   :  { %v134_v20 = vrot.slane %v126_v16, 4  ;;  %v135_v21 = vrot.slane %v127_v17, 4 }
  0x99   :  { %142 = vst [vmem:[#allocation2 + $0x50] sm:$0xf0] %v134_v20 }
  0x9a   :  { %143 = vst [vmem:[#allocation2 + $0x18] sm:$0xf0] %v135_v21 }
  0x9b   :  { %v2888_v25 = vpop.permute.xlu1 %200  ;;  %v199_v26 = vpop.permute.xlu0 %198 }
  0x9c   :  { %v209_v28 = vsel %vm206_vm3, %v199_v26, %v2888_v25  ;;  %v210_v29 = vsel %vm206_vm3, %v2867_v4, %v199_v26 }
  0x9d   :  { %v222_v30 = vmul.f32 %v214_v22, %v210_v29  ;;  %v223_v31 = vmul.f32 %v215_v23, %v209_v28 }
  0x9e   :  { %v289_v32 = vpop.permute.xlu2 %288 }
  0x9f   :  { %v297_v33 = vsel %vm294_vm4, %v287_v18, %v289_v32  ;;  %v230_v34 = vrot.slane %v222_v30, 4  ;;  %v231_v35 = vrot.slane %v223_v31, 4 }
  0xa0   :  { %v310_v36 = vmul.f32 %v302_v27, %v297_v33  ;;  %v402_v33 = vperm.slane %v2020_v7, 2 }
  0xa1   :  { %238 = vst [vmem:[#allocation2 + $0x30] sm:$0xf0] %v230_v34 }
  0xa2   :  { %v318_v37 = vrot.slane %v310_v36, 4  ;;  %239 = vst [vmem:[#allocation2 + $0x68] sm:$0xf0] %v231_v35 }
  0xa4   :  { %326 = vst [vmem:[#allocation2 + $0x8] sm:$0xf0] %v318_v37 }
  0xa6   :  { %v342_v38 = vpop.permute.xlu2 %341 }
  0xab   :  { %v293_v42 = vpop.permute.xlu1 %292  ;;  %v291_v43 = vpop.permute.xlu0 %290 }
  0xac   :  { %v298_v44 = vsel %vm294_vm4, %v293_v42, %v287_v18  ;;  %v295_v45 = vsel %vm294_vm4, %v291_v43, %v293_v42  ;;  %v296_v46 = vsel %vm294_vm4, %v289_v32, %v291_v43  ;;  %v401_v32 = vperm.slane %v2020_v7, 1  ;;  %v2021_v42 = vld [vmem:[%s3067_s1 + $0x20] ss:$8 sm:$0xf] }
  0xad   :  { %v313_v47 = vmul.f32 %v305_v39, %v298_v44  ;;  %v311_v48 = vmul.f32 %v303_v40, %v296_v46  ;;  %v312_v50 = vmul.f32 %v304_v41, %v295_v45  ;;  %v457_v43 = vperm.slane %v2021_v42, 2 }
  0xae   :  { %v387_v54 = vpop.permute.xlu2 %386  ;;  %v458_v44 = vperm.slane %v2021_v42, 3  ;;  %v2745_v7 = vmov 0  }
  0xaf   :  { %v321_v55 = vrot.slane %v313_v47, 4  ;;  %v319_v58 = vrot.slane %v311_v48, 4  ;;  %v320_v59 = vrot.slane %v312_v50, 4  ;;  %2679 = vset.pattern.permute.xlu2 %v2745_v7  ;;  %2680 = vset.pattern.permute.xlu0 %v2745_v7 }
  0xb1   :  { %329 = vst [vmem:[#allocation2 + $0x40] sm:$0xf0] %v321_v55  ;;  %v2015_v55 = vld [vmem:[%s3067_s1 + $0x2] ss:$8 sm:$0xf] }
  0xb2   :  { %327 = vst [vmem:[#allocation2 + $0x88] sm:$0xf0] %v319_v58  ;;  %v455_v58 = vperm.slane %v2021_v42, 0  ;;  %v171_v60 = vperm.slane %v2015_v55, 0 }
  0xb3   :  { %328 = vst [vmem:[#allocation2 + $0x28] sm:$0xf0] %v320_v59  ;;  %v346_v61 = vpop.permute.xlu1 %345  ;;  %v456_v59 = vperm.slane %v2021_v42, 1 }
  0xb6   :  { %v344_v0 = vpop.permute.xlu0 %343  ;;  %v391_v1 = vpop.permute.xlu2 %390 }
  0xb7   :  { %v351_v2 = vsel %vm349_vm5, %v344_v0, %v346_v61  ;;  %v352_v3 = vsel %vm349_vm5, %v342_v38, %v344_v0 }
  0xb8   :  { %v365_v5 = vmul.f32 %v357_v62, %v352_v3  ;;  %v366_v6 = vmul.f32 %v358_v63, %v351_v2 }
  0xba   :  { %369 = vst [vmem:[#allocation2 + $0x58] sm:$0xf] %v365_v5  ;;  %v504_v5 = vld [vmem:[%s3069_s3] sm:$0xff] }
  0xbb   :  { %370 = vst [vmem:[#allocation2 + $0x10] sm:$0xf] %v366_v6  ;;  %507 = vperm.xlu2 %2679, %v504_v5   ;;  %v2553_v5 = vld [vmem:[#allocation4 + $0x78] sm:$0xff] }
  0xbe   :  { %v348_v12 = vpop.permute.xlu0 %347  ;;  %v203_v13 = vpop.permute.xlu2 %202 }
  0xbf   :  { %v350_v16 = vsel %vm349_vm5, %v346_v61, %v348_v12  ;;  %v353_v17 = vsel %vm349_vm5, %v348_v12, %v342_v38  ;;  %v207_v18 = vsel %vm206_vm3, %v203_v13, %v2867_v4  ;;  %v208_v19 = vsel %vm206_vm3, %v2888_v25, %v203_v13  ;;  %v385_v20 = vpop.permute.xlu1 %384 }
  0xc0   :  { %v367_v21 = vmul.f32 %v359_v8, %v350_v16  ;;  %v368_v22 = vmul.f32 %v360_v9, %v353_v17  ;;  %v224_v23 = vmul.f32 %v216_v10, %v208_v19  ;;  %v225_v24 = vmul.f32 %v217_v11, %v207_v18 }
  0xc1   :  { %v395_v26 = vsel %vm392_vm6, %v385_v20, %v387_v54  ;;  %v396_v27 = vsel %vm392_vm6, %v391_v1, %v385_v20  ;;  %v172_v12 = vperm.slane %v2015_v55, 1 }
  0xc2   :  { %371 = vst [vmem:[#allocation2 + $0x98] sm:$0xf] %v367_v21  ;;  %v232_v28 = vrot.slane %v224_v23, 4  ;;  %v233_v29 = vrot.slane %v225_v24, 4  ;;  %v408_v30 = vmul.f32 %v400_v14, %v395_v26  ;;  %v411_v4 = vmul.f32 %v403_v15, %v396_v27 }
  0xc3   :  { %372 = vst [vmem:[#allocation2 + $0x60] sm:$0xf] %v368_v22  ;;  %v174_v14 = vperm.slane %v2015_v55, 3  ;;  %v173_v15 = vperm.slane %v2015_v55, 2  ;;  %v482_v22 = vld [vmem:[#allocation2 + $0x28] sm:$0xff] }
  0xc4   :  { %240 = vst [vmem:[#allocation2 + $0x78] sm:$0xf0] %v232_v28  ;;  %v416_v31 = vrot.slane %v408_v30, 4  ;;  %v419_v25 = vrot.slane %v411_v4, 4  ;;  %v483_v28 = vld [vmem:[#allocation2 + $0x40] sm:$0xff] }
  0xc5   :  { %241 = vst [vmem:[#allocation2 + $0x80] sm:$0xf0] %v233_v29 }
  0xc6   :  { %424 = vst [vmem:[#allocation2 + $0x58] sm:$0xf0] %v416_v31  ;;  %v389_v34 = vpop.permute.xlu0 %388 }
  0xc7   :  { %427 = vst [vmem:[#allocation2 + $0x60] sm:$0xf0] %v419_v25  ;;  %v393_v35 = vsel %vm392_vm6, %v389_v34, %v391_v1  ;;  %v394_v36 = vsel %vm392_vm6, %v387_v54, %v389_v34  ;;  %v444_v37 = vpop.permute.xlu1 %443  ;;  %v75_v34 = vperm.slane %v2845_v52, 2 }
  0xc8   :  { %v409_v38 = vmul.f32 %v401_v32, %v394_v36  ;;  %v410_v39 = vmul.f32 %v402_v33, %v393_v35  ;;  %v76_v35 = vperm.slane %v2845_v52, 3  ;;  %v481_v52 = vld [vmem:[#allocation2 + $0x88] sm:$0xff] }
  0xca   :  { %v417_v40 = vrot.slane %v409_v38, 4  ;;  %v418_v41 = vrot.slane %v410_v39, 4  ;;  %v480_v39 = vld [vmem:[#allocation2 + $0x8] sm:$0xff] }
  0xcc   :  { %425 = vst [vmem:[#allocation2 + $0x10] sm:$0xf0] %v417_v40 }
  0xcd   :  { %426 = vst [vmem:[#allocation2 + $0x98] sm:$0xf0] %v418_v41  ;;  %v484_v36 = vld [vmem:[#allocation2 + $0x58] sm:$0xff] }
  0xce   :  { %v440_v45 = vpop.permute.xlu0 %439  ;;  %v487_v19 = vld [vmem:[#allocation2 + $0x60] sm:$0xff] }
  0xcf   :  { %v446_v46 = vpop.permute.xlu1 %445  ;;  %v499_v4 = vpack.c.bf16 %v487_v19, %v483_v28  ;;  %v2551_v19 = vld [vmem:[#allocation4 + $0x68] sm:$0xff]  ;;  %v2566_v28 = vld [vmem:[#allocation4 + $0xe0] sm:$0xff] }
  0xd0   :  { %v448_v47 = vsel %vm447_vm7, %v444_v37, %v446_v46  ;;  %v451_v48 = vsel %vm447_vm7, %v446_v46, %v440_v45 }
  0xd1   :  { %v465_v50 = vmul.f32 %v457_v43, %v448_v47  ;;  %v466_v54 = vmul.f32 %v458_v44, %v451_v48  ;;  %v496_v43 = vpack.c.bf16 %v484_v36, %v480_v39 }
  0xd3   :  { %469 = vst [vmem:[#allocation2 + $0x70] sm:$0xf] %v465_v50  ;;  %v485_v40 = vld [vmem:[#allocation2 + $0x10] sm:$0xff]  ;;  %v472_v50 = vld [vmem:[#allocation2] sm:$0xff] }
  0xd4   :  { %470 = vst [vmem:[#allocation2 + $0x90] sm:$0xf] %v466_v54  ;;  %v486_v16 = vld [vmem:[#allocation2 + $0x98] sm:$0xff]  ;;  %v497_v47 = vpack.c.bf16 %v485_v40, %v481_v52  ;;  %v2555_v52 = vld [vmem:[#allocation4 + $0x88] sm:$0xff] }
  0xd5   :  { %v498_v27 = vpack.c.bf16 %v486_v16, %v482_v22  ;;  %v473_v54 = vld [vmem:[#allocation2 + $0x38] sm:$0xff]  ;;  %v2567_v22 = vld [vmem:[#allocation4 + $0xe8] sm:$0xff] }
  0xd6   :  { %v442_v61 = vpop.permute.xlu0 %441 }
  0xd7   :  { %v162_v62 = vpop.permute.xlu1 %161  ;;  %v449_v63 = vsel %vm447_vm7, %v442_v61, %v444_v37  ;;  %v450_v0 = vsel %vm447_vm7, %v440_v45, %v442_v61 }
  0xd8   :  { %v167_v1 = vsel %vm163_vm8, %v162_v62, %v2855_v57  ;;  %v463_v2 = vmul.f32 %v455_v58, %v450_v0  ;;  %v464_v3 = vmul.f32 %v456_v59, %v449_v63 }
  0xd9   :  { %v179_v6 = vmul.f32 %v171_v60, %v167_v1 }
  0xda   :  { %467 = vst [vmem:[#allocation2 + $0x20] sm:$0xf] %v463_v2  ;;  %v490_v8 = vld [vmem:[#allocation2 + $0x70] sm:$0xf] }
  0xdb   :  { %183 = vst [vmem:[#allocation2 + $0x30] sm:$0xf] %v179_v6  ;;  %v502_v9 = vpack.c.bf16 %v490_v8, %v490_v8  ;;  %v491_v10 = vld [vmem:[#allocation2 + $0x90] sm:$0xf]  ;;  %v2561_v6 = vld [vmem:[#allocation4 + $0xb8] sm:$0xff] }
  0xdc   :  { %468 = vst [vmem:[#allocation2 + $0x48] sm:$0xf] %v464_v3  ;;  %v503_v11 = vpack.c.bf16 %v491_v10, %v491_v10  ;;  %v2545_v3 = vld [vmem:[#allocation4 + $0x38] sm:$0xff]  ;;  %v2544_v10 = vld [vmem:[#allocation4 + $0x30] sm:$0xff] }
  0xdd   :  { %v522_v13 = vsel %vm514_vm9, %v502_v9, 0  ;;  %v2569_v9 = vld [vmem:[#allocation4 + $0xf8] sm:$0xff] }
  0xde   :  { %558 = vmatpush.bf16.msra.mxu2 %v522_v13  ;;  %v525_v17 = vsel %vm514_vm9, %v503_v11, 0  ;;  %v158_v18 = vpop.permute.xlu0 %157  ;;  %v2552_v11 = vld [vmem:[#allocation4 + $0x70] sm:$0xff] }
  0xdf   :  { %571 = vmatpush.bf16.msra.mxu3 %v525_v17  ;;  %v160_v20 = vpop.permute.xlu1 %159  ;;  %v166_v21 = vsel %vm163_vm8, %v2855_v57, %v158_v18  ;;  %v2560_v13 = vld [vmem:[#allocation4 + $0xb0] sm:$0xff] }
  0xe0   :  { %v164_v23 = vsel %vm163_vm8, %v160_v20, %v162_v62  ;;  %v165_v24 = vsel %vm163_vm8, %v158_v18, %v160_v20  ;;  %v180_v26 = vmul.f32 %v172_v12, %v166_v21  ;;  %v2543_v18 = vld [vmem:[#allocation4 + $0x28] sm:$0xff] }
  0xe1   :  { %v182_v29 = vmul.f32 %v174_v14, %v164_v23  ;;  %v181_v30 = vmul.f32 %v173_v15, %v165_v24  ;;  %v488_v31 = vld [vmem:[#allocation2 + $0x20] sm:$0xf]  ;;  %v2568_v14 = vld [vmem:[#allocation4 + $0xf0] sm:$0xff]  ;;  %v2559_v21 = vld [vmem:[#allocation4 + $0xa8] sm:$0xff] }
  0xe2   :  { %184 = vst [vmem:[#allocation2 + $0x68] sm:$0xf] %v180_v26  ;;  %559 = vmatpush.bf16.msra.mxu2 %v498_v27  ;;  %v500_v25 = vpack.c.bf16 %v488_v31, %v488_v31  ;;  %v476_v46 = vld [vmem:[#allocation2 + $0x30] sm:$0xff]  ;;  %v2542_v23 = vld [vmem:[#allocation4 + $0x20] sm:$0xff] }
  0xe3   :  { %186 = vst [vmem:[#allocation2 + $0x80] sm:$0xf] %v182_v29  ;;  %572 = vmatpush.bf16.msra.mxu3 %v499_v4  ;;  %v489_v57 = vld [vmem:[#allocation2 + $0x48] sm:$0xf]  ;;  %v492_v55 = vpack.c.bf16 %v476_v46, %v472_v50  ;;  %v2550_v24 = vld [vmem:[#allocation4 + $0x60] sm:$0xff] }
  0xe4   :  { %185 = vst [vmem:[#allocation2 + $0x78] sm:$0xf] %v181_v30  ;;  %v516_v32 = vsel %vm514_vm9, %v500_v25, 0  ;;  %v501_v33 = vpack.c.bf16 %v489_v57, %v489_v57  ;;  %v2558_v27 = vld [vmem:[#allocation4 + $0xa0] sm:$0xff]  ;;  %v2541_v57 = vld [vmem:[#allocation4 + $0x18] sm:$0xff]  ;;  %v2563_v46 = vld [vmem:[#allocation4 + $0xc8] sm:$0xff] }
  0xe5   :  { %532 = vmatpush.bf16.msra.mxu0 %v516_v32  ;;  %v2549_v32 = vld [vmem:[#allocation4 + $0x58] sm:$0xff]  ;;  %v2546_v50 = vld [vmem:[#allocation4 + $0x40] sm:$0xff] }
  0xe6   :  { %v519_v37 = vsel %vm514_vm9, %v501_v33, 0  ;;  %v61_v38 = vpop.permute.xlu0 %60 }
  0xe7   :  { %545 = vmatpush.bf16.msra.mxu1 %v519_v37  ;;  %v67_v41 = vsel %vm66_vm1, %v61_v38, %v2853_v56  ;;  %v68_v42 = vsel %vm66_vm1, %v2838_v49, %v61_v38  ;;  %v471_v49 = vld [vmem:[%s3068_s2] sm:$0xf]  ;;  %v2540_v37 = vld [vmem:[#allocation4 + $0x10] sm:$0xff] }
  0xe8   :  { %v83_v44 = vmul.f32 %v75_v34, %v68_v42  ;;  %v84_v45 = vmul.f32 %v76_v35, %v67_v41  ;;  %v2557_v34 = vld [vmem:[#allocation4 + $0x98] sm:$0xff]  ;;  %v2548_v38 = vld [vmem:[#allocation4 + $0x50] sm:$0xff] }
  0xe9   :  { %533 = vmatpush.bf16.msra.mxu0 %v496_v43  ;;  %v477_v48 = vld [vmem:[#allocation2 + $0x68] sm:$0xff]  ;;  %v2565_v35 = vld [vmem:[#allocation4 + $0xd8] sm:$0xff]  ;;  %v2556_v41 = vld [vmem:[#allocation4 + $0x90] sm:$0xff] }
  0xea   :  { %87 = vst [vmem:[#allocation2 + $0x50] sm:$0xf] %v83_v44  ;;  %v493_v58 = vpack.c.bf16 %v477_v48, %v473_v54  ;;  %v479_v61 = vld [vmem:[#allocation2 + $0x80] sm:$0xff]  ;;  %v2564_v42 = vld [vmem:[#allocation4 + $0xd0] sm:$0xff]  ;;  %v2539_v44 = vld [vmem:[#allocation4 + $0x8] sm:$0xff] }
  0xeb   :  { %88 = vst [vmem:[#allocation2 + $0x18] sm:$0xf] %v84_v45  ;;  %546 = vmatpush.bf16.msra.mxu1 %v497_v47  ;;  %v478_v56 = vld [vmem:[#allocation2 + $0x78] sm:$0xff]  ;;  %v2547_v45 = vld [vmem:[#allocation4 + $0x48] sm:$0xff]  ;;  %v2538_v48 = vld [vmem:[#allocation4] sm:$0xff] }
  0xec   :  { %v2554_v54 = vld [vmem:[#allocation4 + $0x80] sm:$0xff] }
  0xed   :  { %534 = vmatpush.bf16.msra.mxu0 %v492_v55  ;;  %v2562_v55 = vld [vmem:[#allocation4 + $0xc0] sm:$0xff] }
  0xef   :  { %547 = vmatpush.bf16.msra.mxu1 %v493_v58  ;;  %v2577_v58 = vld [vmem:[#allocation4 + $0x138] sm:$0xff] }
  0xf0   :  { %2022 = vmatmul.msk.bf16.vlgmr.msra.gmra.mxu0 %vm510_vm10, %v471_v49 }
  0xf1   :  { %v474_v53 = vld [vmem:[#allocation2 + $0x50] sm:$0xff]  ;;  %1788 = vmatpush.bf16.msrb.mxu0 %v2545_v3  ;;  %v2599_v3 = vld [vmem:[#allocation4 + $0x1e8] sm:$0xff] }
  0xf2   :  { %2023 = vmatmul.msk.bf16.vlgmr.msra.gmra.mxu1 %vm510_vm10, %v471_v49  ;;  %v494_v59 = vpack.c.bf16 %v478_v56, %v474_v53  ;;  %v475_v60 = vld [vmem:[#allocation2 + $0x18] sm:$0xff] }
  0xf3   :  { %v495_v62 = vpack.c.bf16 %v479_v61, %v475_v60  ;;  %1801 = vmatpush.bf16.msrb.mxu1 %v2553_v5  ;;  %v2593_v53 = vld [vmem:[#allocation4 + $0x1b8] sm:$0xff]  ;;  %v2584_v60 = vld [vmem:[#allocation4 + $0x170] sm:$0xff]  ;;  %v2574_v5 = vld [vmem:[#allocation4 + $0x120] sm:$0xff] }
  0xf4   :  { %560 = vmatpush.bf16.msra.mxu2 %v494_v59  ;;  %v2601_v56 = vld [vmem:[#allocation4 + $0x1f8] sm:$0xff]  ;;  %v2576_v59 = vld [vmem:[#allocation4 + $0x130] sm:$0xff] }
  0xf5   :  { %573 = vmatpush.bf16.msra.mxu3 %v495_v62  ;;  %1789 = vmatpush.bf16.msrb.mxu0 %v2544_v10  ;;  %v2592_v61 = vld [vmem:[#allocation4 + $0x1b0] sm:$0xff] }
  0xf6   :  { %v2600_v62 = vld [vmem:[#allocation4 + $0x1f0] sm:$0xff] }
  0xf7   :  { %2024 = vmatmul.msk.bf16.vlgmr.msra.gmra.mxu2 %vm510_vm10, %v471_v49  ;;  %1802 = vmatpush.bf16.msrb.mxu1 %v2552_v11  ;;  %v2573_v11 = vld [vmem:[#allocation4 + $0x118] sm:$0xff] }
  0xf8   :  { %2025 = vmatmul.msk.bf16.vlgmr.msra.gmra.mxu3 %vm510_vm10, %v471_v49  ;;  %1814 = vmatpush.bf16.msrb.mxu2 %v2561_v6  ;;  %v2585_v49 = vld [vmem:[#allocation4 + $0x178] sm:$0xff]  ;;  %v2582_v6 = vld [vmem:[#allocation4 + $0x160] sm:$0xff] }
  0xf9   :  { %1827 = vmatpush.bf16.msrb.mxu3 %v2569_v9  ;;  %1790 = vmatpush.bf16.msrb.mxu0 %v2543_v18  ;;  %v2598_v9 = vld [vmem:[#allocation4 + $0x1e0] sm:$0xff]  ;;  %v2580_v18 = vld [vmem:[#allocation4 + $0x150] sm:$0xff] }
  0xfb   :  { %1803 = vmatpush.bf16.msrb.mxu1 %v2551_v19  ;;  %v2588_v19 = vld [vmem:[#allocation4 + $0x190] sm:$0xff] }
  0xfc   :  { %1815 = vmatpush.bf16.msrb.mxu2 %v2560_v13  ;;  %v2581_v13 = vld [vmem:[#allocation4 + $0x158] sm:$0xff] }
  0xfd   :  { %1828 = vmatpush.bf16.msrb.mxu3 %v2568_v14  ;;  %1791 = vmatpush.bf16.msrb.mxu0 %v2542_v23  ;;  %v2589_v14 = vld [vmem:[#allocation4 + $0x198] sm:$0xff]  ;;  %v2587_v23 = vld [vmem:[#allocation4 + $0x188] sm:$0xff] }
  0xff   :  { %1804 = vmatpush.bf16.msrb.mxu1 %v2550_v24  ;;  %v2595_v24 = vld [vmem:[#allocation4 + $0x1c8] sm:$0xff] }
 0x100   :  { %1816 = vmatpush.bf16.msrb.mxu2 %v2559_v21  ;;  %v2571_v21 = vld [vmem:[#allocation4 + $0x108] sm:$0xff] }
 0x101   :  { %1829 = vmatpush.bf16.msrb.mxu3 %v2567_v22  ;;  %1792 = vmatpush.bf16.msrb.mxu0 %v2541_v57  ;;  %v2579_v22 = vld [vmem:[#allocation4 + $0x148] sm:$0xff] }
 0x103   :  { %1805 = vmatpush.bf16.msrb.mxu1 %v2549_v32 }
 0x104   :  { %1817 = vmatpush.bf16.msrb.mxu2 %v2558_v27  ;;  %v2578_v27 = vld [vmem:[#allocation4 + $0x140] sm:$0xff] }
 0x105   :  { %1830 = vmatpush.bf16.msrb.mxu3 %v2566_v28  ;;  %1793 = vmatpush.bf16.msrb.mxu0 %v2540_v37  ;;  %v2586_v28 = vld [vmem:[#allocation4 + $0x180] sm:$0xff] }
 0x107   :  { %1806 = vmatpush.bf16.msrb.mxu1 %v2548_v38 }
 0x108   :  { %1818 = vmatpush.bf16.msrb.mxu2 %v2557_v34 }
 0x109   :  { %1831 = vmatpush.bf16.msrb.mxu3 %v2565_v35  ;;  %1794 = vmatpush.bf16.msrb.mxu0 %v2539_v44  ;;  %v2633_v44 = vld [vmem:[#allocation4 + $0x2f8] sm:$0xff] }
 0x10b   :  { %1807 = vmatpush.bf16.msrb.mxu1 %v2547_v45 }
 0x10c   :  { %1819 = vmatpush.bf16.msrb.mxu2 %v2556_v41  ;;  %v2617_v41 = vld [vmem:[#allocation4 + $0x278] sm:$0xff] }
 0x10d   :  { %1832 = vmatpush.bf16.msrb.mxu3 %v2564_v42  ;;  %1795 = vmatpush.bf16.msrb.mxu0 %v2538_v48 }
 0x10f   :  { %1808 = vmatpush.bf16.msrb.mxu1 %v2546_v50 }
 0x110   :  { %1820 = vmatpush.bf16.msrb.mxu2 %v2555_v52 }
 0x111   :  { %1833 = vmatpush.bf16.msrb.mxu3 %v2563_v46  ;;  %1840 = vmatpush.bf16.msra.mxu0 %v2577_v58  ;;  %v2608_v58 = vld [vmem:[#allocation4 + $0x230] sm:$0xff] }
 0x113   :  { %1853 = vmatpush.bf16.msra.mxu1 %v2585_v49  ;;  %v2616_v49 = vld [vmem:[#allocation4 + $0x270] sm:$0xff] }
 0x114   :  { %1821 = vmatpush.bf16.msrb.mxu2 %v2554_v54 }
 0x115   :  { %v508_v0 = vpop.permute.xlu2 %507  ;;  %1834 = vmatpush.bf16.msrb.mxu3 %v2562_v55  ;;  %1841 = vmatpush.bf16.msra.mxu0 %v2576_v59  ;;  %v2607_v59 = vld [vmem:[#allocation4 + $0x228] sm:$0xff] }
 0x117   :  { %1854 = vmatpush.bf16.msra.mxu1 %v2584_v60  ;;  %v2615_v60 = vld [vmem:[#allocation4 + $0x268] sm:$0xff] }
 0x118   :  { %1866 = vmatpush.bf16.msra.mxu2 %v2593_v53  ;;  %v2624_v53 = vld [vmem:[#allocation4 + $0x2b0] sm:$0xff] }
 0x119   :  { %1879 = vmatpush.bf16.msra.mxu3 %v2601_v56  ;;  %v2632_v56 = vld [vmem:[#allocation4 + $0x2f0] sm:$0xff] }
 0x11c   :  { %1867 = vmatpush.bf16.msra.mxu2 %v2592_v61  ;;  %v2623_v61 = vld [vmem:[#allocation4 + $0x2a8] sm:$0xff] }
 0x11d   :  { %1880 = vmatpush.bf16.msra.mxu3 %v2600_v62  ;;  %v2631_v62 = vld [vmem:[#allocation4 + $0x2e8] sm:$0xff] }
 0x121   :  { %1881 = vmatpush.bf16.msra.mxu3 %v2599_v3 }
 0x125   :  { %1882 = vmatpush.bf16.msra.mxu3 %v2598_v9 }
 0x16d   :  { %v536_v63 = vpop.f32.mrf.mxu0 }
 0x16e   :  { %v537_v1 = vadd.f32 %v536_v63, %v508_v0 }
 0x16f   :  { %v549_v2 = vpop.f32.mrf.mxu1 }
 0x170   :  { %v550_v7 = vadd.f32 %v549_v2, %v508_v0  ;;  %v2981_v8 = vmax.f32 %v537_v1, 0.0  ;;  %v2583_v1 = vld [vmem:[#allocation4 + $0x168] sm:$0xff] }
 0x171   :  { %v2591_v2 = vld [vmem:[#allocation4 + $0x1a8] sm:$0xff]  ;;  %1855 = vmatpush.bf16.msra.mxu1 %v2583_v1  ;;  %v2622_v1 = vld [vmem:[#allocation4 + $0x2a0] sm:$0xff] }
 0x172   :  { %v2983_v12 = vmax.f32 %v550_v7, 0.0  ;;  %601 = vst [vmem:[#allocation1] sm:$0xff] %v2981_v8  ;;  %1868 = vmatpush.bf16.msra.mxu2 %v2591_v2  ;;  %v2590_v7 = vld [vmem:[#allocation4 + $0x1a0] sm:$0xff] }
 0x173   :  { %v2630_v2 = vld [vmem:[#allocation4 + $0x2e0] sm:$0xff] }
 0x174   :  { %v585_v16 = vrot.slane %v2983_v12, 7  ;;  %602 = vst [vmem:[#allocation1 + $0x9] sm:$0xff] %v2983_v12 }
 0x175   :  { %v538_v17 = vpop.f32.mrf.mxu0  ;;  %1856 = vmatpush.bf16.msra.mxu1 %v2582_v6  ;;  %v2605_v6 = vld [vmem:[#allocation4 + $0x218] sm:$0xff] }
 0x176   :  { %v587_v20 = vsel %vm586_vm11, %v2981_v8, %v585_v16  ;;  %1869 = vmatpush.bf16.msra.mxu2 %v2590_v7  ;;  %v2597_v16 = vld [vmem:[#allocation4 + $0x1d8] sm:$0xff]  ;;  %v2572_v17 = vld [vmem:[#allocation4 + $0x110] sm:$0xff] }
 0x177   :  { %593 = vst.msk [vmem:[#allocation3] ss:$2 sm:$0x3] %vm2987_vm12, %v587_v20  ;;  %v551_v51 = vpop.f32.mrf.mxu1  ;;  %1883 = vmatpush.bf16.msra.mxu3 %v2597_v16  ;;  %v2596_v20 = vld [vmem:[#allocation4 + $0x1d0] sm:$0xff]  ;;  %v2613_v7 = vld [vmem:[#allocation4 + $0x258] sm:$0xff] }
 0x178   :  { %v2612_v16 = vld [vmem:[#allocation4 + $0x250] sm:$0xff] }
 0x179   :  { %1857 = vmatpush.bf16.msra.mxu1 %v2581_v13  ;;  %v2629_v13 = vld [vmem:[#allocation4 + $0x2d8] sm:$0xff] }
 0x17a   :  { %v562_v26 = vpop.f32.mrf.mxu2  ;;  %1870 = vmatpush.bf16.msra.mxu2 %v2589_v14  ;;  %v2604_v14 = vld [vmem:[#allocation4 + $0x210] sm:$0xff] }
 0x17b   :  { %v563_v29 = vadd.f32 %v562_v26, %v508_v0  ;;  %v604_v30 = vld [vmem:[#allocation1 + $0x1] ss:$9 sm:$0xff]  ;;  %v575_v4 = vpop.f32.mrf.mxu3  ;;  %1884 = vmatpush.bf16.msra.mxu3 %v2596_v20 }
 0x17c   :  { %607 = vst.msk [vmem:[#allocation3 + $0x4] ss:$2 sm:$0x3] %vm2987_vm12, %v604_v30  ;;  %v576_v31 = vadd.f32 %v575_v4, %v508_v0  ;;  %v2575_v0 = vld [vmem:[#allocation4 + $0x128] sm:$0xff]  ;;  %v2570_v26 = vld [vmem:[#allocation4 + $0x100] sm:$0xff] }
 0x17d   :  { %v2999_v25 = vmax.f32 %v563_v29, 0.0  ;;  %1842 = vmatpush.bf16.msra.mxu0 %v2575_v0  ;;  %1858 = vmatpush.bf16.msra.mxu1 %v2580_v18  ;;  %v2594_v29 = vld [vmem:[#allocation4 + $0x1c0] sm:$0xff]  ;;  %v2628_v18 = vld [vmem:[#allocation4 + $0x2d0] sm:$0xff]  ;;  %v2611_v20 = vld [vmem:[#allocation4 + $0x248] sm:$0xff] }
 0x17e   :  { %v3001_v33 = vmax.f32 %v576_v31, 0.0  ;;  %1871 = vmatpush.bf16.msra.mxu2 %v2588_v19  ;;  %v2614_v0 = vld [vmem:[#allocation4 + $0x260] sm:$0xff]  ;;  %v2603_v19 = vld [vmem:[#allocation4 + $0x208] sm:$0xff] }
 0x17f   :  { %608 = vst [vmem:[#allocation1] sm:$0xff] %v2999_v25  ;;  %1885 = vmatpush.bf16.msra.mxu3 %v2595_v24  ;;  %v2618_v24 = vld [vmem:[#allocation4 + $0x280] sm:$0xff] }
 0x180   :  { %v596_v36 = vrot.slane %v3001_v33, 7  ;;  %609 = vst [vmem:[#allocation1 + $0x9] sm:$0xff] %v3001_v33 }
 0x181   :  { %1843 = vmatpush.bf16.msra.mxu0 %v2574_v5  ;;  %1859 = vmatpush.bf16.msra.mxu1 %v2579_v22  ;;  %v2627_v22 = vld [vmem:[#allocation4 + $0x2c8] sm:$0xff] }
 0x182   :  { %v597_v39 = vsel %vm586_vm11, %v2999_v25, %v596_v36  ;;  %v564_v40 = vpop.f32.mrf.mxu2  ;;  %1872 = vmatpush.bf16.msra.mxu2 %v2587_v23  ;;  %v2610_v23 = vld [vmem:[#allocation4 + $0x240] sm:$0xff] }
 0x183   :  { %600 = vst.msk [vmem:[#allocation3 + $0x1] ss:$2 sm:$0x3] %vm2987_vm12, %v597_v39  ;;  %v577_v43 = vpop.f32.mrf.mxu3  ;;  %1886 = vmatpush.bf16.msra.mxu3 %v2594_v29  ;;  %v2657_v29 = vld [vmem:[#allocation4 + $0x3b8] sm:$0xff] }
 0x184   :  { %v2625_v43 = vld [vmem:[#allocation4 + $0x2b8] sm:$0xff] }
 0x185   :  { %1844 = vmatpush.bf16.msra.mxu0 %v2573_v11  ;;  %1860 = vmatpush.bf16.msra.mxu1 %v2578_v27  ;;  %v2621_v11 = vld [vmem:[#allocation4 + $0x298] sm:$0xff] }
 0x186   :  { %1873 = vmatpush.bf16.msra.mxu2 %v2586_v28  ;;  %v2641_v27 = vld [vmem:[#allocation4 + $0x338] sm:$0xff] }
 0x187   :  { %v611_v47 = vld [vmem:[#allocation1 + $0x1] ss:$9 sm:$0xff] }
 0x188   :  { %614 = vst.msk [vmem:[#allocation3 + $0x5] ss:$2 sm:$0x3] %vm2987_vm12, %v611_v47  ;;  %v2649_v28 = vld [vmem:[#allocation4 + $0x378] sm:$0xff] }
 0x189   :  { %615 = vst [vmem:[#allocation1] sm:$0xff] %v2981_v8  ;;  %1845 = vmatpush.bf16.msra.mxu0 %v2572_v17  ;;  %v2620_v17 = vld [vmem:[#allocation4 + $0x290] sm:$0xff] }
 0x18a   :  { %616 = vst [vmem:[#allocation1 + $0x9] sm:$0xff] %v2983_v12 }
 0x18d   :  { %1846 = vmatpush.bf16.msra.mxu0 %v2571_v21  ;;  %v2619_v21 = vld [vmem:[#allocation4 + $0x288] sm:$0xff] }
 0x18f   :  { %v699_v38 = vld [vmem:[#allocation3] sm:$0xff] }
 0x191   :  { %v618_v63 = vld [vmem:[#allocation1 + $0x2] ss:$9 sm:$0xff]  ;;  %1847 = vmatpush.bf16.msra.mxu0 %v2570_v26 }
 0x192   :  { %622 = vst [vmem:[#allocation1] sm:$0xff] %v2999_v25  ;;  %v2626_v26 = vld [vmem:[#allocation4 + $0x2c0] sm:$0xff] }
 0x193   :  { %623 = vst [vmem:[#allocation1 + $0x9] sm:$0xff] %v3001_v33 }
 0x194   :  { %621 = vst.msk [vmem:[#allocation3 + $0x8] ss:$2 sm:$0x3] %vm2987_vm12, %v618_v63  ;;  %v2606_v63 = vld [vmem:[#allocation4 + $0x220] sm:$0xff] }
 0x19a   :  { %v625_v10 = vld [vmem:[#allocation1 + $0x2] ss:$9 sm:$0xff] }
 0x19b   :  { %629 = vst [vmem:[#allocation1] sm:$0xff] %v2981_v8 }
 0x19c   :  { %630 = vst [vmem:[#allocation1 + $0x9] sm:$0xff] %v2983_v12 }
 0x19d   :  { %628 = vst.msk [vmem:[#allocation3 + $0x9] ss:$2 sm:$0x3] %vm2987_vm12, %v625_v10 }
 0x1a3   :  { %v632_v51 = vld [vmem:[#allocation1 + $0x3] ss:$9 sm:$0xff] }
 0x1a4   :  { %636 = vst [vmem:[#allocation1] sm:$0xff] %v2999_v25 }
 0x1a5   :  { %637 = vst [vmem:[#allocation1 + $0x9] sm:$0xff] %v3001_v33 }
 0x1a6   :  { %635 = vst.msk [vmem:[#allocation3 + $0xc] ss:$2 sm:$0x3] %vm2987_vm12, %v632_v51  ;;  %v2602_v51 = vld [vmem:[#allocation4 + $0x200] sm:$0xff] }
 0x1ac   :  { %v639_v30 = vld [vmem:[#allocation1 + $0x3] ss:$9 sm:$0xff] }
 0x1ad   :  { %643 = vst [vmem:[#allocation1] sm:$0xff] %v2981_v8 }
 0x1ae   :  { %644 = vst [vmem:[#allocation1 + $0x9] sm:$0xff] %v2983_v12 }
 0x1af   :  { %642 = vst.msk [vmem:[#allocation3 + $0xd] ss:$2 sm:$0x3] %vm2987_vm12, %v639_v30  ;;  %v2665_v30 = vld [vmem:[#allocation4 + $0x3f8] sm:$0xff] }
 0x1b5   :  { %v646_v4 = vld [vmem:[#allocation1 + $0x4] ss:$9 sm:$0xff] }
 0x1b6   :  { %649 = vst.msk [vmem:[#allocation3 + $0x10] ss:$2 sm:$0x3] %vm2987_vm12, %v646_v4  ;;  %v700_v39 = vld [vmem:[#allocation3 + $0x8] sm:$0xff] }
 0x1b7   :  { %650 = vst [vmem:[#allocation1] sm:$0xff] %v2999_v25 }
 0x1b8   :  { %651 = vst [vmem:[#allocation1 + $0x9] sm:$0xff] %v3001_v33 }
 0x1bf   :  { %v653_v31 = vld [vmem:[#allocation1 + $0x4] ss:$9 sm:$0xff] }
 0x1c0   :  { %656 = vst.msk [vmem:[#allocation3 + $0x11] ss:$2 sm:$0x3] %vm2987_vm12, %v653_v31 }
 0x1c1   :  { %657 = vst [vmem:[#allocation1] sm:$0xff] %v2981_v8 }
 0x1c2   :  { %658 = vst [vmem:[#allocation1 + $0x9] sm:$0xff] %v2983_v12 }
 0x1c9   :  { %v660_v57 = vld [vmem:[#allocation1 + $0x5] ss:$9 sm:$0xff] }
 0x1ca   :  { %663 = vst.msk [vmem:[#allocation3 + $0x14] ss:$2 sm:$0x3] %vm2987_vm12, %v660_v57 }
 0x1cb   :  { %664 = vst [vmem:[#allocation1] sm:$0xff] %v2999_v25 }
 0x1cc   :  { %665 = vst [vmem:[#allocation1 + $0x9] sm:$0xff] %v3001_v33 }
 0x1d3   :  { %v667_v32 = vld [vmem:[#allocation1 + $0x5] ss:$9 sm:$0xff] }
 0x1d4   :  { %670 = vst.msk [vmem:[#allocation3 + $0x15] ss:$2 sm:$0x3] %vm2987_vm12, %v667_v32 }
 0x1d5   :  { %671 = vst [vmem:[#allocation1] sm:$0xff] %v2981_v8 }
 0x1d6   :  { %672 = vst [vmem:[#allocation1 + $0x9] sm:$0xff] %v2983_v12 }
 0x1db   :  { %v701_v40 = vld [vmem:[#allocation3 + $0x10] sm:$0xff] }
 0x1dd   :  { %v674_v34 = vld [vmem:[#allocation1 + $0x6] ss:$9 sm:$0xff] }
 0x1de   :  { %677 = vst.msk [vmem:[#allocation3 + $0x18] ss:$2 sm:$0x3] %vm2987_vm12, %v674_v34 }
 0x1df   :  { %678 = vst [vmem:[#allocation1] sm:$0xff] %v2999_v25 }
 0x1e0   :  { %679 = vst [vmem:[#allocation1 + $0x9] sm:$0xff] %v3001_v33 }
 0x1e7   :  { %v681_v35 = vld [vmem:[#allocation1 + $0x6] ss:$9 sm:$0xff] }
 0x1e8   :  { %684 = vst.msk [vmem:[#allocation3 + $0x19] ss:$2 sm:$0x3] %vm2987_vm12, %v681_v35 }
 0x1e9   :  { %685 = vst [vmem:[#allocation1] sm:$0xff] %v2981_v8  ;;  %v2609_v8 = vld [vmem:[#allocation4 + $0x238] sm:$0xff] }
 0x1ea   :  { %686 = vst [vmem:[#allocation1 + $0x9] sm:$0xff] %v2983_v12 }
 0x1f1   :  { %v688_v36 = vld [vmem:[#allocation1 + $0x7] ss:$9 sm:$0xff] }
 0x1f2   :  { %691 = vst.msk [vmem:[#allocation3 + $0x1c] ss:$2 sm:$0x3] %vm2987_vm12, %v688_v36  ;;  %v2640_v36 = vld [vmem:[#allocation4 + $0x330] sm:$0xff] }
 0x1f3   :  { %692 = vst [vmem:[#allocation1] sm:$0xff] %v2999_v25 }
 0x1f4   :  { %693 = vst [vmem:[#allocation1 + $0x9] sm:$0xff] %v3001_v33 }
 0x1fb   :  { %v695_v37 = vld [vmem:[#allocation1 + $0x7] ss:$9 sm:$0xff] }
 0x1fc   :  { %698 = vst.msk [vmem:[#allocation3 + $0x1d] ss:$2 sm:$0x3] %vm2987_vm12, %v695_v37  ;;  %v2648_v37 = vld [vmem:[#allocation4 + $0x370] sm:$0xff] }
 0x1fd   :  { %707 = vst [vmem:[#allocation1] ss:$4 sm:$0xff] %v699_v38 }
 0x1fe   :  { %709 = vst [vmem:[#allocation1 + $0x20] ss:$4 sm:$0xff] %v700_v39 }
 0x203   :  { %v702_v33 = vld [vmem:[#allocation3 + $0x18] sm:$0xff] }
 0x204   :  { %v710_v12 = vld.sshfl [vmem:[#allocation1] sm:$0xff pattern:$0x73625140]  ;;  %v711_v42 = vld.sshfl [vmem:[#allocation1 + $0x8] sm:$0xff pattern:$0x73625140] }
 0x205   :  { %v744_v45 = vpack.c.bf16 %v710_v12, %v710_v12  ;;  %v745_v52 = vpack.c.bf16 %v711_v42, %v711_v42  ;;  %v712_v25 = vld.sshfl [vmem:[#allocation1 + $0x10] sm:$0xff pattern:$0x73625140]  ;;  %v713_v46 = vld.sshfl [vmem:[#allocation1 + $0x18] sm:$0xff pattern:$0x73625140] }
 0x206   :  { %v746_v47 = vpack.c.bf16 %v712_v25, %v712_v25  ;;  %v747_v48 = vpack.c.bf16 %v713_v46, %v713_v46  ;;  %718 = vst [vmem:[#allocation1] ss:$4 sm:$0xff] %v701_v40  ;;  %v714_v15 = vld.sshfl [vmem:[#allocation1 + $0x20] sm:$0xff pattern:$0x73625140]  ;;  %v2656_v40 = vld [vmem:[#allocation4 + $0x3b0] sm:$0xff] }
 0x207   :  { %1796 = vmatmul.bf16.vlgmr.msrb.gmra.mxu0 %v744_v45  ;;  %1809 = vmatmul.bf16.vlgmr.msrb.gmra.mxu1 %v745_v52  ;;  %v715_v50 = vld.sshfl [vmem:[#allocation1 + $0x28] sm:$0xff pattern:$0x73625140]  ;;  %v716_v54 = vld.sshfl [vmem:[#allocation1 + $0x30] sm:$0xff pattern:$0x73625140]  ;;  %v748_v3 = vpack.c.bf16 %v714_v15, %v714_v15 }
 0x208   :  { %1822 = vmatmul.bf16.vlgmr.msrb.gmra.mxu2 %v746_v47  ;;  %1835 = vmatmul.bf16.vlgmr.msrb.gmra.mxu3 %v747_v48  ;;  %v717_v55 = vld.sshfl [vmem:[#allocation1 + $0x38] sm:$0xff pattern:$0x73625140]  ;;  %v749_v5 = vpack.c.bf16 %v715_v50, %v715_v50  ;;  %v750_v9 = vpack.c.bf16 %v716_v54, %v716_v54  ;;  %v2647_v12 = vld [vmem:[#allocation4 + $0x368] sm:$0xff]  ;;  %v2646_v45 = vld [vmem:[#allocation4 + $0x360] sm:$0xff] }
 0x209   :  { %1892 = vmatpush.bf16.msrb.mxu0 %v2609_v8  ;;  %1905 = vmatpush.bf16.msrb.mxu1 %v2617_v41  ;;  %719 = vst [vmem:[#allocation1 + $0x20] ss:$4 sm:$0xff] %v702_v33  ;;  %v751_v10 = vpack.c.bf16 %v717_v55, %v717_v55  ;;  %v2664_v8 = vld [vmem:[#allocation4 + $0x3f0] sm:$0xff]  ;;  %v2639_v41 = vld [vmem:[#allocation4 + $0x328] sm:$0xff]  ;;  %v2654_v52 = vld [vmem:[#allocation4 + $0x3a0] sm:$0xff] }
 0x20a   :  { %1918 = vmatpush.bf16.msrb.mxu2 %v2625_v43  ;;  %1931 = vmatpush.bf16.msrb.mxu3 %v2633_v44  ;;  %v2655_v42 = vld [vmem:[#allocation4 + $0x3a8] sm:$0xff]  ;;  %v2638_v44 = vld [vmem:[#allocation4 + $0x320] sm:$0xff]  ;;  %v2637_v46 = vld [vmem:[#allocation4 + $0x318] sm:$0xff] }
 0x20b   :  { %v2663_v43 = vld [vmem:[#allocation4 + $0x3e8] sm:$0xff]  ;;  %v2662_v25 = vld [vmem:[#allocation4 + $0x3e0] sm:$0xff]  ;;  %v2645_v33 = vld [vmem:[#allocation4 + $0x358] sm:$0xff] }
 0x20c   :  { %v2653_v47 = vld [vmem:[#allocation4 + $0x398] sm:$0xff]  ;;  %v2636_v15 = vld [vmem:[#allocation4 + $0x310] sm:$0xff] }
 0x20d   :  { %1893 = vmatpush.bf16.msrb.mxu0 %v2608_v58  ;;  %1906 = vmatpush.bf16.msrb.mxu1 %v2616_v49  ;;  %v720_v4 = vld.sshfl [vmem:[#allocation1] sm:$0xff pattern:$0x73625140]  ;;  %v721_v31 = vld.sshfl [vmem:[#allocation1 + $0x8] sm:$0xff pattern:$0x73625140] }
 0x20e   :  { %1919 = vmatpush.bf16.msrb.mxu2 %v2624_v53  ;;  %1932 = vmatpush.bf16.msrb.mxu3 %v2632_v56  ;;  %v722_v57 = vld.sshfl [vmem:[#allocation1 + $0x10] sm:$0xff pattern:$0x73625140]  ;;  %v723_v32 = vld.sshfl [vmem:[#allocation1 + $0x18] sm:$0xff pattern:$0x73625140]  ;;  %v752_v34 = vpack.c.bf16 %v720_v4, %v720_v4  ;;  %v753_v35 = vpack.c.bf16 %v721_v31, %v721_v31 }
 0x20f   :  { %v754_v38 = vpack.c.bf16 %v722_v57, %v722_v57  ;;  %v755_v39 = vpack.c.bf16 %v723_v32, %v723_v32  ;;  %v2661_v48 = vld [vmem:[#allocation4 + $0x3d8] sm:$0xff]  ;;  %v2644_v50 = vld [vmem:[#allocation4 + $0x350] sm:$0xff]  ;;  %v2635_v58 = vld [vmem:[#allocation4 + $0x308] sm:$0xff] }
 0x210   :  { %v2652_v54 = vld [vmem:[#allocation4 + $0x390] sm:$0xff]  ;;  %v2643_v49 = vld [vmem:[#allocation4 + $0x348] sm:$0xff] }
 0x211   :  { %1894 = vmatpush.bf16.msrb.mxu0 %v2607_v59  ;;  %1907 = vmatpush.bf16.msrb.mxu1 %v2615_v60  ;;  %v2660_v55 = vld [vmem:[#allocation4 + $0x3d0] sm:$0xff]  ;;  %v2651_v53 = vld [vmem:[#allocation4 + $0x388] sm:$0xff]  ;;  %v2634_v59 = vld [vmem:[#allocation4 + $0x300] sm:$0xff] }
 0x212   :  { %1920 = vmatpush.bf16.msrb.mxu2 %v2623_v61  ;;  %1933 = vmatpush.bf16.msrb.mxu3 %v2631_v62  ;;  %v2659_v56 = vld [vmem:[#allocation4 + $0x3c8] sm:$0xff]  ;;  %v2642_v60 = vld [vmem:[#allocation4 + $0x340] sm:$0xff] }
 0x213   :  { %v2650_v61 = vld [vmem:[#allocation4 + $0x380] sm:$0xff] }
 0x214   :  { %v2658_v62 = vld [vmem:[#allocation4 + $0x3c0] sm:$0xff] }
 0x215   :  { %1895 = vmatpush.bf16.msrb.mxu0 %v2606_v63  ;;  %1908 = vmatpush.bf16.msrb.mxu1 %v2614_v0  ;;  %v724_v63 = vld.sshfl [vmem:[#allocation1 + $0x20] sm:$0xff pattern:$0x73625140]  ;;  %v725_v0 = vld.sshfl [vmem:[#allocation1 + $0x28] sm:$0xff pattern:$0x73625140] }
 0x216   :  { %1921 = vmatpush.bf16.msrb.mxu2 %v2622_v1  ;;  %1934 = vmatpush.bf16.msrb.mxu3 %v2630_v2  ;;  %v726_v1 = vld.sshfl [vmem:[#allocation1 + $0x30] sm:$0xff pattern:$0x73625140]  ;;  %v727_v2 = vld.sshfl [vmem:[#allocation1 + $0x38] sm:$0xff pattern:$0x73625140] }
 0x217   :  { %1848 = vmatmul.bf16.vlgmr.msra.gmra.mxu0 %v748_v3  ;;  %1861 = vmatmul.bf16.vlgmr.msra.gmra.mxu1 %v749_v5  ;;  %v756_v3 = vpack.c.bf16 %v724_v63, %v724_v63  ;;  %v757_v5 = vpack.c.bf16 %v725_v0, %v725_v0 }
 0x218   :  { %1874 = vmatmul.bf16.vlgmr.msra.gmra.mxu2 %v750_v9  ;;  %1887 = vmatmul.bf16.vlgmr.msra.gmra.mxu3 %v751_v10 }
 0x219   :  { %1896 = vmatpush.bf16.msrb.mxu0 %v2605_v6  ;;  %1909 = vmatpush.bf16.msrb.mxu1 %v2613_v7  ;;  %v758_v6 = vpack.c.bf16 %v726_v1, %v726_v1  ;;  %v759_v7 = vpack.c.bf16 %v727_v2, %v727_v2 }
 0x21a   :  { %1922 = vmatpush.bf16.msrb.mxu2 %v2621_v11  ;;  %1935 = vmatpush.bf16.msrb.mxu3 %v2629_v13 }
 0x21d   :  { %1897 = vmatpush.bf16.msrb.mxu0 %v2604_v14  ;;  %1910 = vmatpush.bf16.msrb.mxu1 %v2612_v16 }
 0x21e   :  { %1923 = vmatpush.bf16.msrb.mxu2 %v2620_v17  ;;  %1936 = vmatpush.bf16.msrb.mxu3 %v2628_v18 }
 0x221   :  { %1898 = vmatpush.bf16.msrb.mxu0 %v2603_v19  ;;  %1911 = vmatpush.bf16.msrb.mxu1 %v2611_v20 }
 0x222   :  { %1924 = vmatpush.bf16.msrb.mxu2 %v2619_v21  ;;  %1937 = vmatpush.bf16.msrb.mxu3 %v2627_v22 }
 0x225   :  { %1899 = vmatpush.bf16.msrb.mxu0 %v2602_v51  ;;  %1912 = vmatpush.bf16.msrb.mxu1 %v2610_v23 }
 0x226   :  { %1925 = vmatpush.bf16.msrb.mxu2 %v2618_v24  ;;  %1938 = vmatpush.bf16.msrb.mxu3 %v2626_v26  ;;  %v2681_v24 = vld [vmem:[%s3071_s5] ss:$0 sm:$0xff]  ;;  %s2746_s5 = smov [#allocation7]  }
 0x227   :  { %s2002_s9 = sshll.u32 %s2746_s5, 4  ;;  %s2003_s9 = int_to_ptr.vmem [resolvable:$true] %s2002_s9 }
 0x228   :  { %1900 = vmatmul.bf16.vlgmr.msrb.gmra.mxu0 %v752_v34  ;;  %1913 = vmatmul.bf16.vlgmr.msrb.gmra.mxu1 %v753_v35 }
 0x229   :  { %1944 = vmatpush.bf16.msra.mxu0 %v2641_v27  ;;  %1957 = vmatpush.bf16.msra.mxu1 %v2649_v28 }
 0x22a   :  { %1970 = vmatpush.bf16.msra.mxu2 %v2657_v29  ;;  %1983 = vmatpush.bf16.msra.mxu3 %v2665_v30 }
 0x22b   :  { %1926 = vmatmul.bf16.vlgmr.msrb.gmra.mxu2 %v754_v38  ;;  %1939 = vmatmul.bf16.vlgmr.msrb.gmra.mxu3 %v755_v39 }
 0x22d   :  { %1945 = vmatpush.bf16.msra.mxu0 %v2640_v36  ;;  %1958 = vmatpush.bf16.msra.mxu1 %v2648_v37 }
 0x22e   :  { %1971 = vmatpush.bf16.msra.mxu2 %v2656_v40  ;;  %1984 = vmatpush.bf16.msra.mxu3 %v2664_v8 }
 0x231   :  { %1946 = vmatpush.bf16.msra.mxu0 %v2639_v41  ;;  %1959 = vmatpush.bf16.msra.mxu1 %v2647_v12 }
 0x232   :  { %1972 = vmatpush.bf16.msra.mxu2 %v2655_v42  ;;  %1985 = vmatpush.bf16.msra.mxu3 %v2663_v43 }
 0x235   :  { %1947 = vmatpush.bf16.msra.mxu0 %v2638_v44  ;;  %1960 = vmatpush.bf16.msra.mxu1 %v2646_v45 }
 0x236   :  { %1973 = vmatpush.bf16.msra.mxu2 %v2654_v52  ;;  %1986 = vmatpush.bf16.msra.mxu3 %v2662_v25 }
 0x239   :  { %1948 = vmatpush.bf16.msra.mxu0 %v2637_v46  ;;  %1961 = vmatpush.bf16.msra.mxu1 %v2645_v33 }
 0x23a   :  { %1974 = vmatpush.bf16.msra.mxu2 %v2653_v47  ;;  %1987 = vmatpush.bf16.msra.mxu3 %v2661_v48 }
 0x23d   :  { %1949 = vmatpush.bf16.msra.mxu0 %v2636_v15  ;;  %1962 = vmatpush.bf16.msra.mxu1 %v2644_v50 }
 0x23e   :  { %1975 = vmatpush.bf16.msra.mxu2 %v2652_v54  ;;  %1988 = vmatpush.bf16.msra.mxu3 %v2660_v55 }
 0x241   :  { %1950 = vmatpush.bf16.msra.mxu0 %v2635_v58  ;;  %1963 = vmatpush.bf16.msra.mxu1 %v2643_v49 }
 0x242   :  { %1976 = vmatpush.bf16.msra.mxu2 %v2651_v53  ;;  %1989 = vmatpush.bf16.msra.mxu3 %v2659_v56 }
 0x245   :  { %1951 = vmatpush.bf16.msra.mxu0 %v2634_v59  ;;  %1964 = vmatpush.bf16.msra.mxu1 %v2642_v60 }
 0x246   :  { %1977 = vmatpush.bf16.msra.mxu2 %v2650_v61  ;;  %1990 = vmatpush.bf16.msra.mxu3 %v2658_v62 }
 0x248   :  { %1952 = vmatmul.bf16.vlgmr.msra.gmra.mxu0 %v756_v3  ;;  %1965 = vmatmul.bf16.vlgmr.msra.gmra.mxu1 %v757_v5 }
 0x249   :  { %1978 = vmatmul.bf16.vlgmr.msra.gmra.mxu2 %v758_v6  ;;  %1991 = vmatmul.bf16.vlgmr.msra.gmra.mxu3 %v759_v7 }
 0x284   :  { %v1797_v9 = vpop.f32.mrf.mxu0  ;;  %v1810_v10 = vpop.f32.mrf.mxu1 }
 0x285   :  { %v1798_v26 = vadd.f32 %v2681_v24, %v1797_v9 }
 0x287   :  { %v1811_v29 = vadd.f32 %v1810_v10, %v1798_v26 }
 0x28b   :  { %v1823_v11 = vpop.f32.mrf.mxu2  ;;  %v1836_v13 = vpop.f32.mrf.mxu3 }
 0x28c   :  { %v1799_v14 = vpop.f32.mrf.mxu0  ;;  %v1812_v16 = vpop.f32.mrf.mxu1  ;;  %v1824_v31 = vadd.f32 %v1823_v11, %v1811_v29 }
 0x28e   :  { %v1837_v57 = vadd.f32 %v1836_v13, %v1824_v31 }
 0x293   :  { %v1825_v17 = vpop.f32.mrf.mxu2  ;;  %v1838_v18 = vpop.f32.mrf.mxu3 }
 0x294   :  { %v1849_v19 = vpop.f32.mrf.mxu0  ;;  %v1862_v20 = vpop.f32.mrf.mxu1 }
 0x295   :  { %v1850_v32 = vadd.f32 %v1849_v19, %v1837_v57 }
 0x297   :  { %v1863_v38 = vadd.f32 %v1862_v20, %v1850_v32 }
 0x29b   :  { %v1875_v21 = vpop.f32.mrf.mxu2  ;;  %v1888_v22 = vpop.f32.mrf.mxu3 }
 0x29c   :  { %v1851_v51 = vpop.f32.mrf.mxu0  ;;  %v1864_v23 = vpop.f32.mrf.mxu1  ;;  %v1876_v39 = vadd.f32 %v1875_v21, %v1863_v38 }
 0x29e   :  { %v1889_v41 = vadd.f32 %v1888_v22, %v1876_v39 }
 0x2a3   :  { %v1877_v27 = vpop.f32.mrf.mxu2  ;;  %v1890_v28 = vpop.f32.mrf.mxu3 }
 0x2a5   :  { %v1901_v30 = vpop.f32.mrf.mxu0  ;;  %v1914_v4 = vpop.f32.mrf.mxu1 }
 0x2a6   :  { %v1902_v12 = vadd.f32 %v1901_v30, %v1889_v41 }
 0x2a8   :  { %v1915_v42 = vadd.f32 %v1914_v4, %v1902_v12 }
 0x2ad   :  { %v1903_v36 = vpop.f32.mrf.mxu0  ;;  %v1916_v37 = vpop.f32.mrf.mxu1 }
 0x2ae   :  { %v1927_v34 = vpop.f32.mrf.mxu2  ;;  %v1940_v35 = vpop.f32.mrf.mxu3 }
 0x2af   :  { %v1928_v43 = vadd.f32 %v1927_v34, %v1915_v42 }
 0x2b1   :  { %v1941_v44 = vadd.f32 %v1940_v35, %v1928_v43 }
 0x2b6   :  { %v1929_v40 = vpop.f32.mrf.mxu2  ;;  %v1942_v8 = vpop.f32.mrf.mxu3 }
 0x2c5   :  { %v1953_v45 = vpop.f32.mrf.mxu0  ;;  %v1966_v52 = vpop.f32.mrf.mxu1 }
 0x2c6   :  { %v1954_v25 = vadd.f32 %v1953_v45, %v1941_v44 }
 0x2c8   :  { %v1967_v46 = vadd.f32 %v1966_v52, %v1954_v25 }
 0x2cc   :  { %v1979_v33 = vpop.f32.mrf.mxu2  ;;  %v1992_v47 = vpop.f32.mrf.mxu3 }
 0x2cd   :  { %v1980_v48 = vadd.f32 %v1979_v33, %v1967_v46  ;;  %v1955_v15 = vpop.f32.mrf.mxu0  ;;  %v1968_v50 = vpop.f32.mrf.mxu1 }
 0x2cf   :  { %v1993_v54 = vadd.f32 %v1992_v47, %v1980_v48 }
 0x2d1   :  { %1996 = vst [vmem:[#allocation7] sm:$0x3] %v1993_v54 }
 0x2d2   :  { %2007 = dma.vmem_to_hbm [thread:$0]  %s2003_s9, 32, %s2005_s12, [#allocation6]  }
 0x2d4   :  { %v1981_v55 = vpop.f32.mrf.mxu2  ;;  %v1994_v58 = vpop.f32.mrf.mxu3 }
 0x2d5   :  { %2732 = dma.done.wait [#allocation6], 32  }
 0x2d6   :  { %2733 = vsyncadd [#allocation6], 4294967264 }
 0x2d7   :  { %2012 = vsyncpa [#allocation5], 1 }
 0x2d8   :  { %2013 = vsyncpa [#allocation6], 1 }

</bundles_post_ra>
